<compile_context>
chip_gen: v5e
topology: v5e:2x2
jax: 0.10.0
libtpu: 0.0.40
codegen_flags: <defaults>
</compile_context>

<pallas_src>
import jax
import jax.numpy as jnp
from jax import lax
from jax.experimental import pallas as pl
from jax.experimental.pallas import tpu as pltpu


PAD = 8  # rows per timestep (one sublane tile); real batch rows are 0..B-1


def _emb_rnn_l0_kernel(ids_ref, colors_ref, gru_ref, head_ref, out_ref):
    M = ids_ref.shape[0]                    # S * PAD
    S = M // PAD
    G3 = gru_ref.shape[1]                   # 3H
    H = G3 // 3
    V = gru_ref.shape[0] - H - 1            # vocab size
    B = colors_ref.shape[0] // 3

    # ---- fused embedding + input projection: xp = onehot(ids) @ T ----------
    # T = emb @ W_ih^T + b_ih + [b_hh_r, b_hh_z, 0] was precomputed in init.
    ids = ids_ref[...]                                            # (M, 1) int32
    iota = lax.broadcasted_iota(jnp.int32, (M, V), 1)
    one_hot = (ids == iota).astype(jnp.float32)                   # (M, V)
    table = gru_ref[0:V, :]                                       # (V, 3H)
    xp = jnp.dot(one_hot, table, preferred_element_type=jnp.float32)  # (M, 3H)

    whh = gru_ref[V:V + H, :]                                     # (H, 3H)
    bhh_n = gru_ref[V + H:V + H + 1, 2 * H:3 * H]                 # (1, H)

    # ---- GRU recurrence (backward direction), fully unrolled ---------------
    # Hidden state carried at PAD(=8) rows; padding rows evolve but are never
    # read.  Each xp_t slice is a whole aligned sublane tile.
    h = jnp.zeros((PAD, H), jnp.float32)
    for t in range(S):
        xp_t = xp[t * PAD:(t + 1) * PAD, :]                       # (PAD, 3H)
        hp = jnp.dot(h, whh, preferred_element_type=jnp.float32)  # (PAD, 3H)
        # PyTorch gate order [r, z, n]; r and z fused into one sigmoid.
        rz = jax.nn.sigmoid(xp_t[:, 0:2 * H] + hp[:, 0:2 * H])
        r = rz[:, 0:H]
        z = rz[:, H:2 * H]
        n = jnp.tanh(xp_t[:, 2 * H:3 * H] + r * (hp[:, 2 * H:3 * H] + bhh_n))
        h = (1.0 - z) * n + z * h

    h2 = h[0:B, :]                                                # (B, H) real rows

    # ---- 3 shared MLP heads, batched as one candidate-major (3B, .) pass ---
    w1c = head_ref[0:3, :]                                        # (3, H)
    w1h = head_ref[3:3 + H, :]                                    # (H, H)
    w2p = head_ref[3 + H:3 + 2 * H, :]                            # (H, H) lane-padded
    w3p = head_ref[3 + 2 * H:4 + 2 * H, :]                        # (1, H) lane-padded
    b1 = head_ref[4 + 2 * H:5 + 2 * H, :]                         # (1, H)
    b2p = head_ref[5 + 2 * H:6 + 2 * H, :]                        # (1, H) lane-padded
    b3 = head_ref[6 + 2 * H:7 + 2 * H, 0:1]                       # (1, 1)

    cc = colors_ref[...]                                          # (3B, 3) cand-major
    hp1 = jnp.dot(h2, w1h, preferred_element_type=jnp.float32) + b1        # (B, H)
    a1 = jnp.maximum(
        jnp.tile(hp1, (3, 1))
        + jnp.dot(cc, w1c, preferred_element_type=jnp.float32), 0.0)       # (3B, H)
    a2 = jnp.maximum(
        jnp.dot(a1, w2p, preferred_element_type=jnp.float32) + b2p, 0.0)   # (3B, H)
    # linear03 has output_dim=1 -> lane reduction (padded lanes of w3p are 0).
    y = jnp.sum(a2 * w3p, axis=-1, keepdims=True) + b3                     # (3B, 1)
    logits = jnp.concatenate([y[0:B], y[B:2 * B], y[2 * B:3 * B]], axis=1)  # (B, 3)

    # ---- exact softmax over the 3 candidates --------------------------------
    m = jnp.max(logits, axis=-1, keepdims=True)
    e = jnp.exp(logits - m)
    out_ref[...] = e / jnp.sum(e, axis=-1, keepdims=True)


def emb_rnn_l0_forward(params, color_rgbs, context):
    """Equivalent of Emb_RNN_L0.forward(color_rgbs, context)."""
    B, S = context.shape
    assert B <= PAD, "padding scheme assumes batch <= 8; tile the batch otherwise"

    # Layout plumbing only (no compute): reversed / padded / time-major ids
    # and candidate-major colors.
    ids_rev = context.astype(jnp.int32)[:, ::-1].T                # (S, B) reversed
    ids_pad = jnp.zeros((S, PAD), jnp.int32).at[:, :B].set(ids_rev)
    ids_col = ids_pad.reshape(S * PAD, 1)                         # (S*PAD, 1)
    cc = jnp.transpose(color_rgbs.astype(jnp.float32),
                       (1, 0, 2)).reshape(3 * B, 3)               # (3B, 3)

    vmem = pl.BlockSpec(memory_space=pltpu.MemorySpace.VMEM)
    return pl.pallas_call(
        _emb_rnn_l0_kernel,
        out_shape=jax.ShapeDtypeStruct((B, 3), jnp.float32),
        in_specs=[vmem, vmem, vmem, vmem],
        out_specs=vmem,
    )(ids_col, cc, params["gru_slab"], params["head_slab"])


def init_params(key, vocab_size, emb_dim, hidden_dim, output_dim=1):
    """Deterministic synthetic parameters matching the nn.Module's shapes,
    plus the precomputed, packed f32 slabs consumed by the kernel."""
    H, E, V = hidden_dim, emb_dim, vocab_size
    ks = jax.random.split(key, 11)

    def uni(kk, shape, a):
        return jax.random.uniform(kk, shape, jnp.float32, -a, a)

    emb = jax.random.normal(ks[0], (V, E), jnp.float32)
    emb = emb.at[0].set(0.0)                          # padding_idx=0 -> zero row

    kh = 1.0 / jnp.sqrt(H)
    w_ih = uni(ks[1], (3 * H, E), kh)                 # reverse-direction GRU weights
    w_hh = uni(ks[2], (3 * H, H), kh)
    b_ih = uni(ks[3], (3 * H,), kh)
    b_hh = uni(ks[4], (3 * H,), kh)

    k1 = 1.0 / jnp.sqrt(3 + H)
    w1 = uni(ks[5], (H, 3 + H), k1)                   # linear01: (3+H) -> H
    b1 = uni(ks[6], (H,), k1)
    k2 = 1.0 / jnp.sqrt(H)
    w2 = uni(ks[7], (H // 2, H), k2)                  # linear02: H -> H//2
    b2 = uni(ks[8], (H // 2,), k2)
    k3 = 1.0 / jnp.sqrt(H // 2)
    w3 = uni(ks[9], (output_dim, H // 2), k3)         # linear03: H//2 -> 1
    b3 = uni(ks[10], (output_dim,), k3)

    params = dict(embedding=emb, w_ih=w_ih, w_hh=w_hh, b_ih=b_ih, b_hh=b_hh,
                  w1=w1, b1=b1, w2=w2, b2=b2, w3=w3, b3=b3)

    # ---- GRU slab: [ T (V,3H) ; W_hh^T (H,3H) ; b_hh_n in lanes 2H:3H ] -----
    # b_ih and the r/z parts of b_hh are folded into the table; the n part of
    # b_hh must stay inside r*(W_hn h + b_hn) and is kept as a separate row.
    bhh_rz = jnp.concatenate([b_hh[:2 * H], jnp.zeros((H,), jnp.float32)])
    table = emb @ w_ih.T + b_ih[None, :] + bhh_rz[None, :]          # (V, 3H)
    last = jnp.zeros((1, 3 * H), jnp.float32).at[0, 2 * H:].set(b_hh[2 * H:])
    params["gru_slab"] = jnp.concatenate([table, w_hh.T, last], axis=0)

    # ---- Head slab (lane width H): w1c | w1h | w2 | w3 | b1 | b2 | b3 -------
    w1c = w1[:, :3].T                                               # (3, H)
    w1h = w1[:, 3:].T                                               # (H, H)
    w2p = jnp.zeros((H, H), jnp.float32).at[:, :H // 2].set(w2.T)   # lane-padded
    w3p = jnp.zeros((1, H), jnp.float32).at[0, :H // 2].set(w3[0])
    b1r = b1[None, :]
    b2p = jnp.zeros((1, H), jnp.float32).at[0, :H // 2].set(b2)
    b3p = jnp.zeros((1, H), jnp.float32).at[0, 0].set(b3[0])
    params["head_slab"] = jnp.concatenate(
        [w1c, w1h, w2p, w3p, b1r, b2p, b3p], axis=0)                # (3+2H+4, H)

    return params


def reference_forward(params, color_rgbs, context):
    """Pure-JAX reference matching the PyTorch semantics."""
    emb = params["embedding"][context].astype(jnp.float32)          # (B, S, E)
    x_rev = jnp.transpose(emb[:, ::-1, :], (1, 0, 2))                # (S, B, E)
    B = context.shape[0]
    H = params["w_hh"].shape[1]
    wih, whh = params["w_ih"].T, params["w_hh"].T
    bih, bhh = params["b_ih"][None, :], params["b_hh"][None, :]

    def step(h, x_t):
        gi = x_t @ wih + bih
        gh = h @ whh + bhh
        r = jax.nn.sigmoid(gi[:, :H] + gh[:, :H])
        z = jax.nn.sigmoid(gi[:, H:2 * H] + gh[:, H:2 * H])
        n = jnp.tanh(gi[:, 2 * H:] + r * gh[:, 2 * H:])
        return (1.0 - z) * n + z * h, None

    h, _ = lax.scan(step, jnp.zeros((B, H), jnp.float32), x_rev)

    def head(c):
        a1 = jax.nn.relu(jnp.concatenate([c, h], axis=1) @ params["w1"].T
                         + params["b1"])
        a2 = jax.nn.relu(a1 @ params["w2"].T + params["b2"])
        return a2 @ params["w3"].T + params["b3"]

    logits = jnp.concatenate(
        [head(color_rgbs[:, i].astype(jnp.float32)) for i in range(3)], axis=1)
    return jax.nn.softmax(logits, axis=-1)


if __name__ == "__main__":
    # f32 reference matmuls at full precision so the tolerance can stay tight.
    jax.config.update("jax_default_matmul_precision", "highest")

    B, S = 2, 8
    vocab_size, emb_dim, hidden_dim = 20, 32, 32

    key = jax.random.PRNGKey(0)
    kp, kc, kx = jax.random.split(key, 3)
    params = init_params(kp, vocab_size, emb_dim, hidden_dim)
    context = jax.random.randint(kc, (B, S), 0, vocab_size, dtype=jnp.int32)
    color_rgbs = jax.random.uniform(kx, (B, 3, 3), jnp.float32)

    fwd = jax.jit(emb_rnn_l0_forward)
    out = jax.block_until_ready(fwd(params, color_rgbs, context))

    ref = reference_forward(params, color_rgbs, context)
    assert out.shape == (B, 3)
    assert bool(jnp.all(jnp.isfinite(out)))
    assert bool(jnp.allclose(out, ref, atol=1e-4, rtol=1e-4)), (out, ref)
    print("KERNEL_OK")
</pallas_src>

<mosaic_0001>
module attributes {stable_mosaic.version = 11 : i64} {
  func.func @_emb_rnn_l0_kernel(%arg0: memref<64x1xi32, #tpu.memory_space<vmem>>, %arg1: memref<6x3xf32, #tpu.memory_space<vmem>>, %arg2: memref<53x96xf32, #tpu.memory_space<vmem>>, %arg3: memref<71x32xf32, #tpu.memory_space<vmem>>, %arg4: memref<2x3xf32, #tpu.memory_space<vmem>>) attributes {dimension_semantics = [], scalar_prefetch = 0 : i64, scratch_operands = 0 : i64, tpu.core_type = #tpu.core_type<tc>} {
    %c0 = arith.constant 0 : index
    %c0_0 = arith.constant 0 : index
    %0 = vector.load %arg0[%c0, %c0_0] : memref<64x1xi32, #tpu.memory_space<vmem>>, vector<64x1xi32>
    %1 = tpu.iota {dimensions = array<i32: 1>} : vector<64x20xi32>
    %2 = vector.broadcast %0 : vector<64x1xi32> to vector<64x20xi32>
    %3 = arith.cmpi eq, %2, %1 : vector<64x20xi32>
    %4 = arith.extui %3 : vector<64x20xi1> to vector<64x20xi32>
    %5 = arith.sitofp %4 : vector<64x20xi32> to vector<64x20xf32>
    %c0_1 = arith.constant 0 : index
    %c0_2 = arith.constant 0 : index
    %6 = vector.load %arg2[%c0_1, %c0_2] : memref<53x96xf32, #tpu.memory_space<vmem>>, vector<20x96xf32>
    %cst = arith.constant dense<0.000000e+00> : vector<64x96xf32>
    %7 = tpu.matmul %5, %6, %cst {dimension_numbers = #tpu.dot_dimension_numbers<[1], [0], [0], [1], [0, 0, 1, 1], [], []>, precision = #tpu.contract_precision<fp32>} : vector<64x20xf32>, vector<20x96xf32>, vector<64x96xf32> -> vector<64x96xf32>
    %c20 = arith.constant 20 : index
    %c0_3 = arith.constant 0 : index
    %8 = vector.load %arg2[%c20, %c0_3] : memref<53x96xf32, #tpu.memory_space<vmem>>, vector<32x96xf32>
    %c52 = arith.constant 52 : index
    %c64 = arith.constant 64 : index
    %9 = vector.load %arg2[%c52, %c64] : memref<53x96xf32, #tpu.memory_space<vmem>>, vector<1x32xf32>
    %cst_4 = arith.constant 0.000000e+00 : f32
    %10 = vector.broadcast %cst_4 : f32 to vector<8x32xf32>
    %11 = vector.extract_strided_slice %7 {offsets = [0, 0], sizes = [8, 96], strides = [1, 1]} : vector<64x96xf32> to vector<8x96xf32>
    %cst_5 = arith.constant dense<0.000000e+00> : vector<8x96xf32>
    %12 = tpu.matmul %10, %8, %cst_5 {dimension_numbers = #tpu.dot_dimension_numbers<[1], [0], [0], [1], [0, 0, 1, 1], [], []>, precision = #tpu.contract_precision<fp32>} : vector<8x32xf32>, vector<32x96xf32>, vector<8x96xf32> -> vector<8x96xf32>
    %13 = vector.extract_strided_slice %11 {offsets = [0, 0], sizes = [8, 64], strides = [1, 1]} : vector<8x96xf32> to vector<8x64xf32>
    %14 = vector.extract_strided_slice %12 {offsets = [0, 0], sizes = [8, 64], strides = [1, 1]} : vector<8x96xf32> to vector<8x64xf32>
    %15 = arith.addf %13, %14 : vector<8x64xf32>
    %16 = arith.negf %15 : vector<8x64xf32>
    %17 = math.exp %16 : vector<8x64xf32>
    %cst_6 = arith.constant 1.000000e+00 : f32
    %18 = vector.broadcast %cst_6 : f32 to vector<8x64xf32>
    %19 = arith.addf %18, %17 : vector<8x64xf32>
    %20 = arith.divf %18, %19 : vector<8x64xf32>
    %21 = vector.extract_strided_slice %20 {offsets = [0, 0], sizes = [8, 32], strides = [1, 1]} : vector<8x64xf32> to vector<8x32xf32>
    %22 = vector.extract_strided_slice %20 {offsets = [0, 32], sizes = [8, 32], strides = [1, 1]} : vector<8x64xf32> to vector<8x32xf32>
    %23 = vector.extract_strided_slice %11 {offsets = [0, 64], sizes = [8, 32], strides = [1, 1]} : vector<8x96xf32> to vector<8x32xf32>
    %24 = vector.extract_strided_slice %12 {offsets = [0, 64], sizes = [8, 32], strides = [1, 1]} : vector<8x96xf32> to vector<8x32xf32>
    %25 = vector.broadcast %9 : vector<1x32xf32> to vector<8x32xf32>
    %26 = arith.addf %24, %25 : vector<8x32xf32>
    %27 = arith.mulf %21, %26 : vector<8x32xf32>
    %28 = arith.addf %23, %27 : vector<8x32xf32>
    %29 = math.tanh %28 : vector<8x32xf32>
    %cst_7 = arith.constant 1.000000e+00 : f32
    %30 = vector.broadcast %cst_7 : f32 to vector<8x32xf32>
    %31 = arith.subf %30, %22 : vector<8x32xf32>
    %32 = arith.mulf %31, %29 : vector<8x32xf32>
    %33 = arith.mulf %22, %10 : vector<8x32xf32>
    %34 = arith.addf %32, %33 : vector<8x32xf32>
    %35 = vector.extract_strided_slice %7 {offsets = [8, 0], sizes = [8, 96], strides = [1, 1]} : vector<64x96xf32> to vector<8x96xf32>
    %cst_8 = arith.constant dense<0.000000e+00> : vector<8x96xf32>
    %36 = tpu.matmul %34, %8, %cst_8 {dimension_numbers = #tpu.dot_dimension_numbers<[1], [0], [0], [1], [0, 0, 1, 1], [], []>, precision = #tpu.contract_precision<fp32>} : vector<8x32xf32>, vector<32x96xf32>, vector<8x96xf32> -> vector<8x96xf32>
    %37 = vector.extract_strided_slice %35 {offsets = [0, 0], sizes = [8, 64], strides = [1, 1]} : vector<8x96xf32> to vector<8x64xf32>
    %38 = vector.extract_strided_slice %36 {offsets = [0, 0], sizes = [8, 64], strides = [1, 1]} : vector<8x96xf32> to vector<8x64xf32>
    %39 = arith.addf %37, %38 : vector<8x64xf32>
    %40 = arith.negf %39 : vector<8x64xf32>
    %41 = math.exp %40 : vector<8x64xf32>
    %cst_9 = arith.constant 1.000000e+00 : f32
    %42 = vector.broadcast %cst_9 : f32 to vector<8x64xf32>
    %43 = arith.addf %42, %41 : vector<8x64xf32>
    %44 = arith.divf %42, %43 : vector<8x64xf32>
    %45 = vector.extract_strided_slice %44 {offsets = [0, 0], sizes = [8, 32], strides = [1, 1]} : vector<8x64xf32> to vector<8x32xf32>
    %46 = vector.extract_strided_slice %44 {offsets = [0, 32], sizes = [8, 32], strides = [1, 1]} : vector<8x64xf32> to vector<8x32xf32>
    %47 = vector.extract_strided_slice %35 {offsets = [0, 64], sizes = [8, 32], strides = [1, 1]} : vector<8x96xf32> to vector<8x32xf32>
    %48 = vector.extract_strided_slice %36 {offsets = [0, 64], sizes = [8, 32], strides = [1, 1]} : vector<8x96xf32> to vector<8x32xf32>
    %49 = vector.broadcast %9 : vector<1x32xf32> to vector<8x32xf32>
    %50 = arith.addf %48, %49 : vector<8x32xf32>
    %51 = arith.mulf %45, %50 : vector<8x32xf32>
    %52 = arith.addf %47, %51 : vector<8x32xf32>
    %53 = math.tanh %52 : vector<8x32xf32>
    %cst_10 = arith.constant 1.000000e+00 : f32
    %54 = vector.broadcast %cst_10 : f32 to vector<8x32xf32>
    %55 = arith.subf %54, %46 : vector<8x32xf32>
    %56 = arith.mulf %55, %53 : vector<8x32xf32>
    %57 = arith.mulf %46, %34 : vector<8x32xf32>
    %58 = arith.addf %56, %57 : vector<8x32xf32>
    %59 = vector.extract_strided_slice %7 {offsets = [16, 0], sizes = [8, 96], strides = [1, 1]} : vector<64x96xf32> to vector<8x96xf32>
    %cst_11 = arith.constant dense<0.000000e+00> : vector<8x96xf32>
    %60 = tpu.matmul %58, %8, %cst_11 {dimension_numbers = #tpu.dot_dimension_numbers<[1], [0], [0], [1], [0, 0, 1, 1], [], []>, precision = #tpu.contract_precision<fp32>} : vector<8x32xf32>, vector<32x96xf32>, vector<8x96xf32> -> vector<8x96xf32>
    %61 = vector.extract_strided_slice %59 {offsets = [0, 0], sizes = [8, 64], strides = [1, 1]} : vector<8x96xf32> to vector<8x64xf32>
    %62 = vector.extract_strided_slice %60 {offsets = [0, 0], sizes = [8, 64], strides = [1, 1]} : vector<8x96xf32> to vector<8x64xf32>
    %63 = arith.addf %61, %62 : vector<8x64xf32>
    %64 = arith.negf %63 : vector<8x64xf32>
    %65 = math.exp %64 : vector<8x64xf32>
    %cst_12 = arith.constant 1.000000e+00 : f32
    %66 = vector.broadcast %cst_12 : f32 to vector<8x64xf32>
    %67 = arith.addf %66, %65 : vector<8x64xf32>
    %68 = arith.divf %66, %67 : vector<8x64xf32>
    %69 = vector.extract_strided_slice %68 {offsets = [0, 0], sizes = [8, 32], strides = [1, 1]} : vector<8x64xf32> to vector<8x32xf32>
    %70 = vector.extract_strided_slice %68 {offsets = [0, 32], sizes = [8, 32], strides = [1, 1]} : vector<8x64xf32> to vector<8x32xf32>
    %71 = vector.extract_strided_slice %59 {offsets = [0, 64], sizes = [8, 32], strides = [1, 1]} : vector<8x96xf32> to vector<8x32xf32>
    %72 = vector.extract_strided_slice %60 {offsets = [0, 64], sizes = [8, 32], strides = [1, 1]} : vector<8x96xf32> to vector<8x32xf32>
    %73 = vector.broadcast %9 : vector<1x32xf32> to vector<8x32xf32>
    %74 = arith.addf %72, %73 : vector<8x32xf32>
    %75 = arith.mulf %69, %74 : vector<8x32xf32>
    %76 = arith.addf %71, %75 : vector<8x32xf32>
    %77 = math.tanh %76 : vector<8x32xf32>
    %cst_13 = arith.constant 1.000000e+00 : f32
    %78 = vector.broadcast %cst_13 : f32 to vector<8x32xf32>
    %79 = arith.subf %78, %70 : vector<8x32xf32>
    %80 = arith.mulf %79, %77 : vector<8x32xf32>
    %81 = arith.mulf %70, %58 : vector<8x32xf32>
    %82 = arith.addf %80, %81 : vector<8x32xf32>
    %83 = vector.extract_strided_slice %7 {offsets = [24, 0], sizes = [8, 96], strides = [1, 1]} : vector<64x96xf32> to vector<8x96xf32>
    %cst_14 = arith.constant dense<0.000000e+00> : vector<8x96xf32>
    %84 = tpu.matmul %82, %8, %cst_14 {dimension_numbers = #tpu.dot_dimension_numbers<[1], [0], [0], [1], [0, 0, 1, 1], [], []>, precision = #tpu.contract_precision<fp32>} : vector<8x32xf32>, vector<32x96xf32>, vector<8x96xf32> -> vector<8x96xf32>
    %85 = vector.extract_strided_slice %83 {offsets = [0, 0], sizes = [8, 64], strides = [1, 1]} : vector<8x96xf32> to vector<8x64xf32>
    %86 = vector.extract_strided_slice %84 {offsets = [0, 0], sizes = [8, 64], strides = [1, 1]} : vector<8x96xf32> to vector<8x64xf32>
    %87 = arith.addf %85, %86 : vector<8x64xf32>
    %88 = arith.negf %87 : vector<8x64xf32>
    %89 = math.exp %88 : vector<8x64xf32>
    %cst_15 = arith.constant 1.000000e+00 : f32
    %90 = vector.broadcast %cst_15 : f32 to vector<8x64xf32>
    %91 = arith.addf %90, %89 : vector<8x64xf32>
    %92 = arith.divf %90, %91 : vector<8x64xf32>
    %93 = vector.extract_strided_slice %92 {offsets = [0, 0], sizes = [8, 32], strides = [1, 1]} : vector<8x64xf32> to vector<8x32xf32>
    %94 = vector.extract_strided_slice %92 {offsets = [0, 32], sizes = [8, 32], strides = [1, 1]} : vector<8x64xf32> to vector<8x32xf32>
    %95 = vector.extract_strided_slice %83 {offsets = [0, 64], sizes = [8, 32], strides = [1, 1]} : vector<8x96xf32> to vector<8x32xf32>
    %96 = vector.extract_strided_slice %84 {offsets = [0, 64], sizes = [8, 32], strides = [1, 1]} : vector<8x96xf32> to vector<8x32xf32>
    %97 = vector.broadcast %9 : vector<1x32xf32> to vector<8x32xf32>
    %98 = arith.addf %96, %97 : vector<8x32xf32>
    %99 = arith.mulf %93, %98 : vector<8x32xf32>
    %100 = arith.addf %95, %99 : vector<8x32xf32>
    %101 = math.tanh %100 : vector<8x32xf32>
    %cst_16 = arith.constant 1.000000e+00 : f32
    %102 = vector.broadcast %cst_16 : f32 to vector<8x32xf32>
    %103 = arith.subf %102, %94 : vector<8x32xf32>
    %104 = arith.mulf %103, %101 : vector<8x32xf32>
    %105 = arith.mulf %94, %82 : vector<8x32xf32>
    %106 = arith.addf %104, %105 : vector<8x32xf32>
    %107 = vector.extract_strided_slice %7 {offsets = [32, 0], sizes = [8, 96], strides = [1, 1]} : vector<64x96xf32> to vector<8x96xf32>
    %cst_17 = arith.constant dense<0.000000e+00> : vector<8x96xf32>
    %108 = tpu.matmul %106, %8, %cst_17 {dimension_numbers = #tpu.dot_dimension_numbers<[1], [0], [0], [1], [0, 0, 1, 1], [], []>, precision = #tpu.contract_precision<fp32>} : vector<8x32xf32>, vector<32x96xf32>, vector<8x96xf32> -> vector<8x96xf32>
    %109 = vector.extract_strided_slice %107 {offsets = [0, 0], sizes = [8, 64], strides = [1, 1]} : vector<8x96xf32> to vector<8x64xf32>
    %110 = vector.extract_strided_slice %108 {offsets = [0, 0], sizes = [8, 64], strides = [1, 1]} : vector<8x96xf32> to vector<8x64xf32>
    %111 = arith.addf %109, %110 : vector<8x64xf32>
    %112 = arith.negf %111 : vector<8x64xf32>
    %113 = math.exp %112 : vector<8x64xf32>
    %cst_18 = arith.constant 1.000000e+00 : f32
    %114 = vector.broadcast %cst_18 : f32 to vector<8x64xf32>
    %115 = arith.addf %114, %113 : vector<8x64xf32>
    %116 = arith.divf %114, %115 : vector<8x64xf32>
    %117 = vector.extract_strided_slice %116 {offsets = [0, 0], sizes = [8, 32], strides = [1, 1]} : vector<8x64xf32> to vector<8x32xf32>
    %118 = vector.extract_strided_slice %116 {offsets = [0, 32], sizes = [8, 32], strides = [1, 1]} : vector<8x64xf32> to vector<8x32xf32>
    %119 = vector.extract_strided_slice %107 {offsets = [0, 64], sizes = [8, 32], strides = [1, 1]} : vector<8x96xf32> to vector<8x32xf32>
    %120 = vector.extract_strided_slice %108 {offsets = [0, 64], sizes = [8, 32], strides = [1, 1]} : vector<8x96xf32> to vector<8x32xf32>
    %121 = vector.broadcast %9 : vector<1x32xf32> to vector<8x32xf32>
    %122 = arith.addf %120, %121 : vector<8x32xf32>
    %123 = arith.mulf %117, %122 : vector<8x32xf32>
    %124 = arith.addf %119, %123 : vector<8x32xf32>
    %125 = math.tanh %124 : vector<8x32xf32>
    %cst_19 = arith.constant 1.000000e+00 : f32
    %126 = vector.broadcast %cst_19 : f32 to vector<8x32xf32>
    %127 = arith.subf %126, %118 : vector<8x32xf32>
    %128 = arith.mulf %127, %125 : vector<8x32xf32>
    %129 = arith.mulf %118, %106 : vector<8x32xf32>
    %130 = arith.addf %128, %129 : vector<8x32xf32>
    %131 = vector.extract_strided_slice %7 {offsets = [40, 0], sizes = [8, 96], strides = [1, 1]} : vector<64x96xf32> to vector<8x96xf32>
    %cst_20 = arith.constant dense<0.000000e+00> : vector<8x96xf32>
    %132 = tpu.matmul %130, %8, %cst_20 {dimension_numbers = #tpu.dot_dimension_numbers<[1], [0], [0], [1], [0, 0, 1, 1], [], []>, precision = #tpu.contract_precision<fp32>} : vector<8x32xf32>, vector<32x96xf32>, vector<8x96xf32> -> vector<8x96xf32>
    %133 = vector.extract_strided_slice %131 {offsets = [0, 0], sizes = [8, 64], strides = [1, 1]} : vector<8x96xf32> to vector<8x64xf32>
    %134 = vector.extract_strided_slice %132 {offsets = [0, 0], sizes = [8, 64], strides = [1, 1]} : vector<8x96xf32> to vector<8x64xf32>
    %135 = arith.addf %133, %134 : vector<8x64xf32>
    %136 = arith.negf %135 : vector<8x64xf32>
    %137 = math.exp %136 : vector<8x64xf32>
    %cst_21 = arith.constant 1.000000e+00 : f32
    %138 = vector.broadcast %cst_21 : f32 to vector<8x64xf32>
    %139 = arith.addf %138, %137 : vector<8x64xf32>
    %140 = arith.divf %138, %139 : vector<8x64xf32>
    %141 = vector.extract_strided_slice %140 {offsets = [0, 0], sizes = [8, 32], strides = [1, 1]} : vector<8x64xf32> to vector<8x32xf32>
    %142 = vector.extract_strided_slice %140 {offsets = [0, 32], sizes = [8, 32], strides = [1, 1]} : vector<8x64xf32> to vector<8x32xf32>
    %143 = vector.extract_strided_slice %131 {offsets = [0, 64], sizes = [8, 32], strides = [1, 1]} : vector<8x96xf32> to vector<8x32xf32>
    %144 = vector.extract_strided_slice %132 {offsets = [0, 64], sizes = [8, 32], strides = [1, 1]} : vector<8x96xf32> to vector<8x32xf32>
    %145 = vector.broadcast %9 : vector<1x32xf32> to vector<8x32xf32>
    %146 = arith.addf %144, %145 : vector<8x32xf32>
    %147 = arith.mulf %141, %146 : vector<8x32xf32>
    %148 = arith.addf %143, %147 : vector<8x32xf32>
    %149 = math.tanh %148 : vector<8x32xf32>
    %cst_22 = arith.constant 1.000000e+00 : f32
    %150 = vector.broadcast %cst_22 : f32 to vector<8x32xf32>
    %151 = arith.subf %150, %142 : vector<8x32xf32>
    %152 = arith.mulf %151, %149 : vector<8x32xf32>
    %153 = arith.mulf %142, %130 : vector<8x32xf32>
    %154 = arith.addf %152, %153 : vector<8x32xf32>
    %155 = vector.extract_strided_slice %7 {offsets = [48, 0], sizes = [8, 96], strides = [1, 1]} : vector<64x96xf32> to vector<8x96xf32>
    %cst_23 = arith.constant dense<0.000000e+00> : vector<8x96xf32>
    %156 = tpu.matmul %154, %8, %cst_23 {dimension_numbers = #tpu.dot_dimension_numbers<[1], [0], [0], [1], [0, 0, 1, 1], [], []>, precision = #tpu.contract_precision<fp32>} : vector<8x32xf32>, vector<32x96xf32>, vector<8x96xf32> -> vector<8x96xf32>
    %157 = vector.extract_strided_slice %155 {offsets = [0, 0], sizes = [8, 64], strides = [1, 1]} : vector<8x96xf32> to vector<8x64xf32>
    %158 = vector.extract_strided_slice %156 {offsets = [0, 0], sizes = [8, 64], strides = [1, 1]} : vector<8x96xf32> to vector<8x64xf32>
    %159 = arith.addf %157, %158 : vector<8x64xf32>
    %160 = arith.negf %159 : vector<8x64xf32>
    %161 = math.exp %160 : vector<8x64xf32>
    %cst_24 = arith.constant 1.000000e+00 : f32
    %162 = vector.broadcast %cst_24 : f32 to vector<8x64xf32>
    %163 = arith.addf %162, %161 : vector<8x64xf32>
    %164 = arith.divf %162, %163 : vector<8x64xf32>
    %165 = vector.extract_strided_slice %164 {offsets = [0, 0], sizes = [8, 32], strides = [1, 1]} : vector<8x64xf32> to vector<8x32xf32>
    %166 = vector.extract_strided_slice %164 {offsets = [0, 32], sizes = [8, 32], strides = [1, 1]} : vector<8x64xf32> to vector<8x32xf32>
    %167 = vector.extract_strided_slice %155 {offsets = [0, 64], sizes = [8, 32], strides = [1, 1]} : vector<8x96xf32> to vector<8x32xf32>
    %168 = vector.extract_strided_slice %156 {offsets = [0, 64], sizes = [8, 32], strides = [1, 1]} : vector<8x96xf32> to vector<8x32xf32>
    %169 = vector.broadcast %9 : vector<1x32xf32> to vector<8x32xf32>
    %170 = arith.addf %168, %169 : vector<8x32xf32>
    %171 = arith.mulf %165, %170 : vector<8x32xf32>
    %172 = arith.addf %167, %171 : vector<8x32xf32>
    %173 = math.tanh %172 : vector<8x32xf32>
    %cst_25 = arith.constant 1.000000e+00 : f32
    %174 = vector.broadcast %cst_25 : f32 to vector<8x32xf32>
    %175 = arith.subf %174, %166 : vector<8x32xf32>
    %176 = arith.mulf %175, %173 : vector<8x32xf32>
    %177 = arith.mulf %166, %154 : vector<8x32xf32>
    %178 = arith.addf %176, %177 : vector<8x32xf32>
    %179 = vector.extract_strided_slice %7 {offsets = [56, 0], sizes = [8, 96], strides = [1, 1]} : vector<64x96xf32> to vector<8x96xf32>
    %cst_26 = arith.constant dense<0.000000e+00> : vector<8x96xf32>
    %180 = tpu.matmul %178, %8, %cst_26 {dimension_numbers = #tpu.dot_dimension_numbers<[1], [0], [0], [1], [0, 0, 1, 1], [], []>, precision = #tpu.contract_precision<fp32>} : vector<8x32xf32>, vector<32x96xf32>, vector<8x96xf32> -> vector<8x96xf32>
    %181 = vector.extract_strided_slice %179 {offsets = [0, 0], sizes = [8, 64], strides = [1, 1]} : vector<8x96xf32> to vector<8x64xf32>
    %182 = vector.extract_strided_slice %180 {offsets = [0, 0], sizes = [8, 64], strides = [1, 1]} : vector<8x96xf32> to vector<8x64xf32>
    %183 = arith.addf %181, %182 : vector<8x64xf32>
    %184 = arith.negf %183 : vector<8x64xf32>
    %185 = math.exp %184 : vector<8x64xf32>
    %cst_27 = arith.constant 1.000000e+00 : f32
    %186 = vector.broadcast %cst_27 : f32 to vector<8x64xf32>
    %187 = arith.addf %186, %185 : vector<8x64xf32>
    %188 = arith.divf %186, %187 : vector<8x64xf32>
    %189 = vector.extract_strided_slice %188 {offsets = [0, 0], sizes = [8, 32], strides = [1, 1]} : vector<8x64xf32> to vector<8x32xf32>
    %190 = vector.extract_strided_slice %188 {offsets = [0, 32], sizes = [8, 32], strides = [1, 1]} : vector<8x64xf32> to vector<8x32xf32>
    %191 = vector.extract_strided_slice %179 {offsets = [0, 64], sizes = [8, 32], strides = [1, 1]} : vector<8x96xf32> to vector<8x32xf32>
    %192 = vector.extract_strided_slice %180 {offsets = [0, 64], sizes = [8, 32], strides = [1, 1]} : vector<8x96xf32> to vector<8x32xf32>
    %193 = vector.broadcast %9 : vector<1x32xf32> to vector<8x32xf32>
    %194 = arith.addf %192, %193 : vector<8x32xf32>
    %195 = arith.mulf %189, %194 : vector<8x32xf32>
    %196 = arith.addf %191, %195 : vector<8x32xf32>
    %197 = math.tanh %196 : vector<8x32xf32>
    %cst_28 = arith.constant 1.000000e+00 : f32
    %198 = vector.broadcast %cst_28 : f32 to vector<8x32xf32>
    %199 = arith.subf %198, %190 : vector<8x32xf32>
    %200 = arith.mulf %199, %197 : vector<8x32xf32>
    %201 = arith.mulf %190, %178 : vector<8x32xf32>
    %202 = arith.addf %200, %201 : vector<8x32xf32>
    %203 = vector.extract_strided_slice %202 {offsets = [0, 0], sizes = [2, 32], strides = [1, 1]} : vector<8x32xf32> to vector<2x32xf32>
    %c0_29 = arith.constant 0 : index
    %c0_30 = arith.constant 0 : index
    %204 = vector.load %arg3[%c0_29, %c0_30] : memref<71x32xf32, #tpu.memory_space<vmem>>, vector<3x32xf32>
    %c3 = arith.constant 3 : index
    %c0_31 = arith.constant 0 : index
    %205 = vector.load %arg3[%c3, %c0_31] : memref<71x32xf32, #tpu.memory_space<vmem>>, vector<32x32xf32>
    %c35 = arith.constant 35 : index
    %c0_32 = arith.constant 0 : index
    %206 = vector.load %arg3[%c35, %c0_32] : memref<71x32xf32, #tpu.memory_space<vmem>>, vector<32x32xf32>
    %c67 = arith.constant 67 : index
    %c0_33 = arith.constant 0 : index
    %207 = vector.load %arg3[%c67, %c0_33] : memref<71x32xf32, #tpu.memory_space<vmem>>, vector<1x32xf32>
    %c68 = arith.constant 68 : index
    %c0_34 = arith.constant 0 : index
    %208 = vector.load %arg3[%c68, %c0_34] : memref<71x32xf32, #tpu.memory_space<vmem>>, vector<1x32xf32>
    %c69 = arith.constant 69 : index
    %c0_35 = arith.constant 0 : index
    %209 = vector.load %arg3[%c69, %c0_35] : memref<71x32xf32, #tpu.memory_space<vmem>>, vector<1x32xf32>
    %c70 = arith.constant 70 : index
    %c0_36 = arith.constant 0 : index
    %210 = vector.load %arg3[%c70, %c0_36] : memref<71x32xf32, #tpu.memory_space<vmem>>, vector<1x1xf32>
    %c0_37 = arith.constant 0 : index
    %c0_38 = arith.constant 0 : index
    %211 = vector.load %arg1[%c0_37, %c0_38] : memref<6x3xf32, #tpu.memory_space<vmem>>, vector<6x3xf32>
    %cst_39 = arith.constant dense<0.000000e+00> : vector<2x32xf32>
    %212 = tpu.matmul %203, %205, %cst_39 {dimension_numbers = #tpu.dot_dimension_numbers<[1], [0], [0], [1], [0, 0, 1, 1], [], []>, precision = #tpu.contract_precision<fp32>} : vector<2x32xf32>, vector<32x32xf32>, vector<2x32xf32> -> vector<2x32xf32>
    %213 = vector.broadcast %208 : vector<1x32xf32> to vector<2x32xf32>
    %214 = arith.addf %212, %213 : vector<2x32xf32>
    %215 = tpu.concatenate %214, %214, %214 in 0 : vector<2x32xf32>, vector<2x32xf32>, vector<2x32xf32> -> vector<6x32xf32>
    %cst_40 = arith.constant dense<0.000000e+00> : vector<6x32xf32>
    %216 = tpu.matmul %211, %204, %cst_40 {dimension_numbers = #tpu.dot_dimension_numbers<[1], [0], [0], [1], [0, 0, 1, 1], [], []>, precision = #tpu.contract_precision<fp32>} : vector<6x3xf32>, vector<3x32xf32>, vector<6x32xf32> -> vector<6x32xf32>
    %217 = arith.addf %215, %216 : vector<6x32xf32>
    %cst_41 = arith.constant 0.000000e+00 : f32
    %218 = vector.broadcast %cst_41 : f32 to vector<6x32xf32>
    %219 = arith.maximumf %217, %218 : vector<6x32xf32>
    %cst_42 = arith.constant dense<0.000000e+00> : vector<6x32xf32>
    %220 = tpu.matmul %219, %206, %cst_42 {dimension_numbers = #tpu.dot_dimension_numbers<[1], [0], [0], [1], [0, 0, 1, 1], [], []>, precision = #tpu.contract_precision<fp32>} : vector<6x32xf32>, vector<32x32xf32>, vector<6x32xf32> -> vector<6x32xf32>
    %221 = vector.broadcast %209 : vector<1x32xf32> to vector<6x32xf32>
    %222 = arith.addf %220, %221 : vector<6x32xf32>
    %cst_43 = arith.constant 0.000000e+00 : f32
    %223 = vector.broadcast %cst_43 : f32 to vector<6x32xf32>
    %224 = arith.maximumf %222, %223 : vector<6x32xf32>
    %225 = vector.broadcast %207 : vector<1x32xf32> to vector<6x32xf32>
    %226 = arith.mulf %224, %225 : vector<6x32xf32>
    %cst_44 = arith.constant dense<0.000000e+00> : vector<6xf32>
    %227 = vector.multi_reduction <add>, %226, %cst_44 [1] : vector<6x32xf32> to vector<6xf32>
    %228 = vector.shape_cast %227 : vector<6xf32> to vector<6x1xf32>
    %229 = vector.broadcast %210 : vector<1x1xf32> to vector<6x1xf32>
    %230 = arith.addf %228, %229 : vector<6x1xf32>
    %231 = vector.extract_strided_slice %230 {offsets = [0, 0], sizes = [2, 1], strides = [1, 1]} : vector<6x1xf32> to vector<2x1xf32>
    %232 = vector.extract_strided_slice %230 {offsets = [2, 0], sizes = [2, 1], strides = [1, 1]} : vector<6x1xf32> to vector<2x1xf32>
    %233 = vector.extract_strided_slice %230 {offsets = [4, 0], sizes = [2, 1], strides = [1, 1]} : vector<6x1xf32> to vector<2x1xf32>
    %234 = tpu.concatenate %231, %232, %233 in 1 : vector<2x1xf32>, vector<2x1xf32>, vector<2x1xf32> -> vector<2x3xf32>
    %cst_45 = arith.constant dense<0xFF800000> : vector<2xf32>
    %235 = vector.multi_reduction <maximumf>, %234, %cst_45 [1] : vector<2x3xf32> to vector<2xf32>
    %236 = vector.shape_cast %235 : vector<2xf32> to vector<2x1xf32>
    %237 = vector.broadcast %236 : vector<2x1xf32> to vector<2x3xf32>
    %238 = arith.subf %234, %237 : vector<2x3xf32>
    %239 = math.exp %238 : vector<2x3xf32>
    %cst_46 = arith.constant dense<0.000000e+00> : vector<2xf32>
    %240 = vector.multi_reduction <add>, %239, %cst_46 [1] : vector<2x3xf32> to vector<2xf32>
    %241 = vector.shape_cast %240 : vector<2xf32> to vector<2x1xf32>
    %242 = vector.broadcast %241 : vector<2x1xf32> to vector<2x3xf32>
    %243 = arith.divf %239, %242 : vector<2x3xf32>
    %c0_47 = arith.constant 0 : index
    %c0_48 = arith.constant 0 : index
    %244 = vector.load %arg4[%c0_47, %c0_48] : memref<2x3xf32, #tpu.memory_space<vmem>>, vector<2x3xf32>
    tpu.vector_store %arg4[%c0_47, %c0_48], %243 {strides = array<i32>} : memref<2x3xf32, #tpu.memory_space<vmem>>, vector<2x3xf32>,
    return
  }
}

</mosaic_0001>

<bundles_post_ra>
// kernel: emb_rnn_l0_forward.1
= control target key start
LH: loop header
LB: loop body
LE: loop exit
PB: predicated region body
PF: predicated region fallthrough
CT: control target
= control target key end

     0   :  { %vm104_vm0 = vcmask 1043456   ;;  %v3098_v2 = vmov 0   ;;  %s3711_s0 = inlined_call_operand.vmem [shape: s32[64,1], index: 0, kind: input, shape index: {}]   ;;  %s3712_s1 = inlined_call_operand.vmem [shape: f32[6,3], index: 1, kind: input, shape index: {}]   ;;  %s3713_s2 = inlined_call_operand.vmem [shape: f32[53,96], index: 2, kind: input, shape index: {}]   ;;  %s3714_s3 = inlined_call_operand.vmem [shape: f32[71,32], index: 3, kind: input, shape index: {}]   ;;  %s3715_s4 = inlined_call_operand.hbm [shape: f32[2,3], index: 4, kind: output, shape index: {}]  }
   0x1   :  { %v20_v0 = vld [vmem:[%s3711_s0 + $0x10] sm:$0xff]  ;;  %v18_v1 = vld [vmem:[%s3711_s0] sm:$0xff]  ;;  %3012 = vset.pattern.permute.xlu1 %v3098_v2  ;;  %3011 = vset.pattern.permute.xlu0 %v3098_v2  ;;  %v77_v6 = vld [vmem:[%s3713_s2 + $0x8] sm:$0xff] }
   0x2   :  { %35 = vperm.xlu1 %3012, %v20_v0   ;;  %29 = vperm.xlu0 %3011, %v18_v1   ;;  %v22_v3 = vld [vmem:[%s3711_s0 + $0x20] sm:$0xff]  ;;  %v78_v4 = vld [vmem:[%s3713_s2 + $0x10] sm:$0xf]  ;;  %v123_v8 = vand.u32 4294901760, %v77_v6 }
   0x3   :  { %3013 = vset.pattern.permute.xlu2 %v3098_v2  ;;  %v106_v5 = vsel %vm104_vm0, %v78_v4, 0 }
   0x4   :  { %41 = vperm.xlu2 %3013, %v22_v3   ;;  %v121_v7 = vand.u32 4294901760, %v106_v5 }
   0x5   :  { %9 = vsyncpa [#allocation3], 0  ;;  %v212_v10 = vsub.f32 %v77_v6, %v123_v8  ;;  %v21_v11 = vld [vmem:[%s3711_s0 + $0x18] sm:$0xff]  ;;  %v19_v12 = vld [vmem:[%s3711_s0 + $0x8] sm:$0xff]  ;;  %v26_v37 = vlaneseq  ;;  %vm79_vm1 = vcmask 162816   ;;  %v3099_v44 = vmov 0.0  }
   0x6   :  { %v206_v9 = vsub.f32 %v106_v5, %v121_v7  ;;  %333 = vmatpush.msra.mxu3 %v121_v7  ;;  %122 = vmatpush.msra.mxu0 %v121_v7  ;;  %v23_v15 = vld [vmem:[%s3711_s0 + $0x28] sm:$0xff]  ;;  %v25_v20 = vld [vmem:[%s3711_s0 + $0x38] sm:$0xff]  ;;  %v24_v21 = vld [vmem:[%s3711_s0 + $0x30] sm:$0xff]  ;;  %s3100_s20 = smov 64   ;;  %s3101_s21 = smov 96   ;;  %vm502_vm14 = vcmask 261120  }
   0x7   :  { %v213_v14 = vand.u32 4294901760, %v212_v10  ;;  %v76_v22 = vld [vmem:[%s3713_s2] sm:$0xff]  ;;  %v500_v28 = vld [vmem:[%s3713_s2 + $0x2c] sm:$0xff]  ;;  %v3195_v40 = vand.u32 127, %v26_v37  ;;  %s3102_s23 = smov 2   ;;  %s2955_s27 = sshll.u32 %s3715_s4, 4  ;;  %s2956_s27 = int_to_ptr.hbm [resolvable:$true] %s2955_s27 }
   0x8   :  { %v207_v13 = vand.u32 4294901760, %v206_v9  ;;  %271 = vmatpush.msra.mxu2 %v206_v9  ;;  %335 = vmatpush.msra.mxu3 %v123_v8  ;;  %v125_v23 = vand.u32 4294901760, %v76_v22  ;;  %v3167_v29 = vand.u32 4294901760, %v500_v28  ;;  %v499_v34 = vld [vmem:[%s3713_s2 + $0x24] sm:$0xff]  ;;  %v498_v49 = vld [vmem:[%s3713_s2 + $0x1c] sm:$0xff] }
   0x9   :  { %124 = vmatpush.msra.mxu0 %v123_v8  ;;  %v214_v17 = vsub.f32 %v212_v10, %v213_v14  ;;  %v3184_v35 = vand.u32 4294901760, %v499_v34  ;;  %v3214_v50 = vand.u32 4294901760, %v498_v49 }
   0xa   :  { %38 = vperm.xlu1 %3012, %v21_v11   ;;  %32 = vperm.xlu0 %3011, %v19_v12   ;;  %v208_v16 = vsub.f32 %v206_v9, %v207_v13  ;;  %v218_v24 = vsub.f32 %v76_v22, %v125_v23  ;;  %v3171_v30 = vsub.f32 %v500_v28, %v3167_v29 }
   0xb   :  { %274 = vmatpush.msra.mxu2 %v212_v10  ;;  %v215_v19 = vand.u32 4294901760, %v214_v17  ;;  %337 = vmatpush.msra.mxu3 %v125_v23  ;;  %v3188_v36 = vsub.f32 %v499_v34, %v3184_v35  ;;  %v3222_v54 = vsub.f32 %v498_v49, %v3214_v50  ;;  %v497_v10 = vld [vmem:[%s3713_s2 + $0x14] sm:$0xff] }
   0xc   :  { %44 = vperm.xlu2 %3013, %v23_v15   ;;  %v209_v18 = vand.u32 4294901760, %v208_v16  ;;  %126 = vmatpush.msra.mxu0 %v125_v23  ;;  %v219_v25 = vand.u32 4294901760, %v218_v24  ;;  %v3174_v31 = vand.u32 4294901760, %v3171_v30  ;;  %v3257_v11 = vand.u32 4294901760, %v497_v10 }
   0xd   :  { %277 = vmatpush.msra.mxu2 %v218_v24  ;;  %v3191_v38 = vand.u32 4294901760, %v3188_v36  ;;  %v3235_v59 = vand.u32 4294901760, %v3222_v54 }
   0xe   :  { %210 = vmatpush.msra.mxu1 %v209_v18  ;;  %403 = vmatpush.msrb.mxu0 %v207_v13  ;;  %v220_v26 = vsub.f32 %v218_v24, %v219_v25  ;;  %v550_v32 = vsub.f32 %v3171_v30, %v3174_v31  ;;  %v3264_v13 = vsub.f32 %v497_v10, %v3257_v11 }
   0xf   :  { %519 = vmatpush.msrb.mxu2 %v3167_v29  ;;  %v556_v39 = vsub.f32 %v3188_v36, %v3191_v38  ;;  %v562_v62 = vsub.f32 %v3222_v54, %v3235_v59 }
  0x10   :  { %216 = vmatpush.msra.mxu1 %v215_v19  ;;  %407 = vmatpush.msrb.mxu0 %v213_v14  ;;  %v221_v27 = vand.u32 4294901760, %v220_v26  ;;  %v3178_v33 = vand.u32 4294901760, %v550_v32  ;;  %v3273_v18 = vand.u32 4294901760, %v3264_v13 }
  0x11   :  { %521 = vmatpush.msrb.mxu2 %v3184_v35  ;;  %v3197_v41 = vand.u32 4294901760, %v556_v39  ;;  %v3241_v1 = vand.u32 4294901760, %v562_v62 }
  0x12   :  { %50 = vperm.xlu1 %3012, %v25_v20   ;;  %47 = vperm.xlu0 %3011, %v24_v21   ;;  %v568_v19 = vsub.f32 %v3264_v13, %v3273_v18 }
  0x13   :  { %411 = vmatpush.msrb.mxu0 %v219_v25  ;;  %222 = vmatpush.msra.mxu1 %v221_v27 }
  0x14   :  { %552 = vmatpush.msrb.mxu3 %v3178_v33  ;;  %523 = vmatpush.msrb.mxu2 %v3214_v50  ;;  %v3280_v22 = vand.u32 4294901760, %v568_v19 }
  0x15   :  { %459 = vmatpush.msrb.mxu1 %v121_v7 }
  0x16   :  { %558 = vmatpush.msrb.mxu3 %v3197_v41  ;;  %525 = vmatpush.msrb.mxu2 %v3257_v11 }
  0x17   :  { %461 = vmatpush.msrb.mxu1 %v123_v8 }
  0x18   :  { %564 = vmatpush.msrb.mxu3 %v3241_v1 }
  0x19   :  { %463 = vmatpush.msrb.mxu1 %v125_v23 }
  0x1a   :  { %570 = vmatpush.msrb.mxu3 %v3280_v22 }
  0x5e   :  { %v42_v4 = vpop.permute.xlu2 %41 }
  0x5f   :  { %vm56_vm6 = vcmp.eq.s32.totalorder %v42_v4, %v3195_v40 }
  0x60   :  { %v3260_v12 = vsel %vm56_vm6, 1.0, %v3099_v44 }
  0x61   :  { %v93_v17 = vsel %vm79_vm1, %v3260_v12, 0 }
  0x62   :  { %v160_v21 = vsub.f32 %v93_v17, %v93_v17 }
  0x64   :  { %v161_v26 = vand.u32 4294901760, %v160_v21 }
  0x66   :  { %v45_v15 = vpop.permute.xlu2 %44  ;;  %v162_v28 = vsub.f32 %v160_v21, %v161_v26 }
  0x67   :  { %vm57_vm7 = vcmp.eq.s32.totalorder %v45_v15, %v3195_v40 }
  0x68   :  { %v3284_v23 = vsel %vm57_vm7, 1.0, %v3099_v44  ;;  %v163_v39 = vand.u32 4294901760, %v162_v28 }
  0x69   :  { %v96_v27 = vsel %vm79_vm1, %v3284_v23, 0 }
  0x6a   :  { %v168_v32 = vsub.f32 %v96_v27, %v96_v27 }
  0x74   :  { %v30_v42 = vpop.permute.xlu0 %29  ;;  %v36_v43 = vpop.permute.xlu1 %35 }
  0x75   :  { %vm52_vm2 = vcmp.eq.s32.totalorder %v30_v42, %v3195_v40  ;;  %vm54_vm3 = vcmp.eq.s32.totalorder %v36_v43, %v3195_v40  ;;  %v169_v42 = vand.u32 4294901760, %v168_v32 }
  0x76   :  { %v3202_v45 = vsel %vm52_vm2, 1.0, %v3099_v44  ;;  %v3217_v51 = vsel %vm54_vm3, 1.0, %v3099_v44 }
  0x77   :  { %2972 = vmatmul.msk.f32.vlgmr.msra.gmra.mxu1 %vm79_vm1, %v3202_v45  ;;  %v81_v46 = vsel %vm79_vm1, %v3202_v45, 0  ;;  %v87_v58 = vsel %vm79_vm1, %v3217_v51, 0 }
  0x78   :  { %v128_v47 = vsub.f32 %v81_v46, %v81_v46  ;;  %1140 = vmatpush.msra.mxu1 %v3167_v29  ;;  %v144_v0 = vsub.f32 %v87_v58, %v87_v58  ;;  %v170_v46 = vsub.f32 %v168_v32, %v169_v42 }
  0x7a   :  { %280 = vmatmul.f32.vlgmr.msra.gmra.mxu2 %v128_v47  ;;  %v129_v48 = vand.u32 4294901760, %v128_v47  ;;  %1142 = vmatpush.msra.mxu1 %v3184_v35  ;;  %v145_v6 = vand.u32 4294901760, %v144_v0  ;;  %v171_v49 = vand.u32 4294901760, %v170_v46 }
  0x7b   :  { %590 = vmatpush.msra.mxu2 %v3171_v30 }
  0x7c   :  { %341 = vmatmul.f32.vlgmr.msra.gmra.mxu3 %v129_v48  ;;  %v33_v52 = vpop.permute.xlu0 %32  ;;  %v130_v53 = vsub.f32 %v128_v47, %v129_v48  ;;  %1144 = vmatpush.msra.mxu1 %v3214_v50  ;;  %v39_v60 = vpop.permute.xlu1 %38  ;;  %v146_v8 = vsub.f32 %v144_v0, %v145_v6 }
  0x7d   :  { %vm53_vm4 = vcmp.eq.s32.totalorder %v33_v52, %v3195_v40  ;;  %vm55_vm5 = vcmp.eq.s32.totalorder %v39_v60, %v3195_v40  ;;  %593 = vmatpush.msra.mxu2 %v3188_v36  ;;  %619 = vmatpush.msra.mxu3 %v3167_v29 }
  0x7e   :  { %v3226_v55 = vsel %vm53_vm4, 1.0, %v3099_v44  ;;  %v131_v56 = vand.u32 4294901760, %v130_v53  ;;  %v3245_v2 = vsel %vm55_vm5, 1.0, %v3099_v44  ;;  %1146 = vmatpush.msra.mxu1 %v3257_v11  ;;  %v147_v14 = vand.u32 4294901760, %v146_v8 }
  0x7f   :  { %2973 = vmatmul.msk.f32.gmra.mxu1 %vm79_vm1, %v3226_v55  ;;  %v84_v57 = vsel %vm79_vm1, %v3226_v55, 0  ;;  %v90_v7 = vsel %vm79_vm1, %v3245_v2, 0  ;;  %596 = vmatpush.msra.mxu2 %v3222_v54 }
  0x80   :  { %132 = vmatmul.f32.vlgmr.msra.gmra.mxu0 %v131_v56  ;;  %v136_v61 = vsub.f32 %v84_v57, %v84_v57  ;;  %v152_v9 = vsub.f32 %v90_v7, %v90_v7  ;;  %621 = vmatpush.msra.mxu3 %v3184_v35 }
  0x81   :  { %1109 = vmatpush.msra.mxu0 %v3174_v31  ;;  %599 = vmatpush.msra.mxu2 %v3264_v13 }
  0x82   :  { %285 = vmatmul.f32.gmra.mxu2 %v136_v61  ;;  %v137_v63 = vand.u32 4294901760, %v136_v61  ;;  %v153_v16 = vand.u32 4294901760, %v152_v9  ;;  %623 = vmatpush.msra.mxu3 %v3214_v50 }
  0x83   :  { %1113 = vmatpush.msra.mxu0 %v3191_v38 }
  0x84   :  { %347 = vmatmul.f32.gmra.mxu3 %v137_v63  ;;  %v138_v3 = vsub.f32 %v136_v61, %v137_v63  ;;  %v154_v20 = vsub.f32 %v152_v9, %v153_v16  ;;  %v48_v24 = vpop.permute.xlu0 %47  ;;  %v51_v37 = vpop.permute.xlu1 %50 }
  0x85   :  { %1117 = vmatpush.msra.mxu0 %v3235_v59  ;;  %vm58_vm8 = vcmp.eq.s32.totalorder %v48_v24, %v3195_v40  ;;  %625 = vmatpush.msra.mxu3 %v3257_v11  ;;  %vm59_vm9 = vcmp.eq.s32.totalorder %v51_v37, %v3195_v40 }
  0x86   :  { %v139_v5 = vand.u32 4294901760, %v138_v3  ;;  %v155_v25 = vand.u32 4294901760, %v154_v20  ;;  %v3297_v34 = vsel %vm58_vm8, 1.0, %v3099_v44  ;;  %v3306_v48 = vsel %vm59_vm9, 1.0, %v3099_v44 }
  0x87   :  { %2974 = vmatmul.msk.f32.gmra.mxu1 %vm79_vm1, %v3217_v51  ;;  %1121 = vmatpush.msra.mxu0 %v3273_v18  ;;  %v99_v43 = vsel %vm79_vm1, %v3297_v34, 0  ;;  %v102_v53 = vsel %vm79_vm1, %v3306_v48, 0 }
  0x88   :  { %140 = vmatmul.f32.gmra.mxu0 %v139_v5  ;;  %v176_v47 = vsub.f32 %v99_v43, %v99_v43  ;;  %v184_v57 = vsub.f32 %v102_v53, %v102_v53 }
  0x8a   :  { %290 = vmatmul.f32.gmra.mxu2 %v144_v0  ;;  %v177_v52 = vand.u32 4294901760, %v176_v47  ;;  %v185_v58 = vand.u32 4294901760, %v184_v57 }
  0x8c   :  { %353 = vmatmul.f32.gmra.mxu3 %v145_v6  ;;  %v178_v56 = vsub.f32 %v176_v47, %v177_v52  ;;  %v186_v60 = vsub.f32 %v184_v57, %v185_v58 }
  0x8e   :  { %v179_v40 = vand.u32 4294901760, %v178_v56  ;;  %v187_v61 = vand.u32 4294901760, %v186_v60 }
  0x8f   :  { %2975 = vmatmul.msk.f32.gmra.mxu1 %vm79_vm1, %v3245_v2 }
  0x90   :  { %148 = vmatmul.f32.gmra.mxu0 %v147_v14 }
  0x92   :  { %295 = vmatmul.f32.gmra.mxu2 %v152_v9 }
  0x94   :  { %359 = vmatmul.f32.gmra.mxu3 %v153_v16 }
  0x97   :  { %2976 = vmatmul.msk.f32.gmra.mxu1 %vm79_vm1, %v3260_v12 }
  0x98   :  { %156 = vmatmul.f32.gmra.mxu0 %v155_v25 }
  0x9a   :  { %300 = vmatmul.f32.gmra.mxu2 %v160_v21 }
  0x9c   :  { %365 = vmatmul.f32.gmra.mxu3 %v161_v26 }
  0x9f   :  { %2977 = vmatmul.msk.f32.gmra.mxu1 %vm79_vm1, %v3284_v23 }
  0xa0   :  { %164 = vmatmul.f32.gmra.mxu0 %v163_v39 }
  0xa2   :  { %305 = vmatmul.f32.gmra.mxu2 %v168_v32 }
  0xa4   :  { %371 = vmatmul.f32.gmra.mxu3 %v169_v42 }
  0xa7   :  { %2978 = vmatmul.msk.f32.gmra.mxu1 %vm79_vm1, %v3297_v34 }
  0xa8   :  { %172 = vmatmul.f32.gmra.mxu0 %v171_v49 }
  0xaa   :  { %310 = vmatmul.f32.gmra.mxu2 %v176_v47 }
  0xac   :  { %377 = vmatmul.f32.gmra.mxu3 %v177_v52 }
  0xaf   :  { %2979 = vmatmul.msk.f32.gmra.mxu1 %vm79_vm1, %v3306_v48 }
  0xb0   :  { %180 = vmatmul.f32.gmra.mxu0 %v179_v40 }
  0xb2   :  { %315 = vmatmul.f32.gmra.mxu2 %v184_v57 }
  0xb4   :  { %383 = vmatmul.f32.gmra.mxu3 %v185_v58 }
  0xb7   :  { %2988 = vmatmul.msk.f32.vlgmr.msrb.gmra.mxu1 %vm79_vm1, %v3202_v45 }
  0xb8   :  { %188 = vmatmul.f32.gmra.mxu0 %v187_v61  ;;  %1310 = vmatpush.msrb.mxu1 %v3167_v29 }
  0xba   :  { %531 = vmatmul.f32.vlgmr.msrb.gmra.mxu2 %v3099_v44  ;;  %1312 = vmatpush.msrb.mxu1 %v3184_v35 }
  0xbb   :  { %648 = vmatpush.msrb.mxu2 %v3174_v31 }
  0xbc   :  { %572 = vmatmul.f32.vlgmr.msrb.gmra.mxu3 %v3099_v44  ;;  %1314 = vmatpush.msrb.mxu1 %v3214_v50 }
  0xbd   :  { %652 = vmatpush.msrb.mxu2 %v3191_v38  ;;  %679 = vmatpush.msrb.mxu3 %v3167_v29 }
  0xbe   :  { %1316 = vmatpush.msrb.mxu1 %v3257_v11 }
  0xbf   :  { %2989 = vmatmul.msk.f32.gmra.mxu1 %vm79_vm1, %v3226_v55  ;;  %656 = vmatpush.msrb.mxu2 %v3235_v59 }
  0xc0   :  { %2980 = vmatmul.msk.f32.vlgmr.msrb.gmra.mxu0 %vm79_vm1, %v3202_v45  ;;  %681 = vmatpush.msrb.mxu3 %v3184_v35 }
  0xc1   :  { %660 = vmatpush.msrb.mxu2 %v3273_v18  ;;  %1281 = vmatpush.msrb.mxu0 %v3171_v30 }
  0xc2   :  { %602 = vmatmul.f32.vlgmr.msra.gmra.mxu2 %v3099_v44  ;;  %683 = vmatpush.msrb.mxu3 %v3214_v50 }
  0xc3   :  { %750 = vmatpush.msra.mxu2 %v3167_v29  ;;  %1284 = vmatpush.msrb.mxu0 %v3188_v36 }
  0xc4   :  { %629 = vmatmul.f32.vlgmr.msra.gmra.mxu3 %v3099_v44 }
  0xc5   :  { %685 = vmatpush.msrb.mxu3 %v3257_v11  ;;  %752 = vmatpush.msra.mxu2 %v3184_v35 }
  0xc6   :  { %1287 = vmatpush.msrb.mxu0 %v3222_v54 }
  0xc7   :  { %783 = vmatpush.msra.mxu3 %v3178_v33  ;;  %2990 = vmatmul.msk.f32.gmra.mxu1 %vm79_vm1, %v3217_v51 }
  0xc8   :  { %754 = vmatpush.msra.mxu2 %v3214_v50  ;;  %2981 = vmatmul.msk.f32.gmra.mxu0 %vm79_vm1, %v3226_v55 }
  0xc9   :  { %789 = vmatpush.msra.mxu3 %v3197_v41  ;;  %1290 = vmatpush.msrb.mxu0 %v3264_v13 }
  0xca   :  { %756 = vmatpush.msra.mxu2 %v3257_v11 }
  0xcb   :  { %662 = vmatmul.f32.vlgmr.msrb.gmra.mxu2 %v3099_v44  ;;  %795 = vmatpush.msra.mxu3 %v3241_v1 }
  0xcc   :  { %821 = vmatpush.msrb.mxu2 %v3171_v30  ;;  %687 = vmatmul.f32.vlgmr.msrb.gmra.mxu3 %v3099_v44 }
  0xcd   :  { %801 = vmatpush.msra.mxu3 %v3280_v22 }
  0xce   :  { %824 = vmatpush.msrb.mxu2 %v3188_v36 }
  0xcf   :  { %850 = vmatpush.msrb.mxu3 %v3167_v29  ;;  %2991 = vmatmul.msk.f32.gmra.mxu1 %vm79_vm1, %v3245_v2 }
  0xd0   :  { %827 = vmatpush.msrb.mxu2 %v3222_v54  ;;  %2982 = vmatmul.msk.f32.gmra.mxu0 %vm79_vm1, %v3217_v51 }
  0xd1   :  { %852 = vmatpush.msrb.mxu3 %v3184_v35 }
  0xd2   :  { %830 = vmatpush.msrb.mxu2 %v3264_v13 }
  0xd3   :  { %854 = vmatpush.msrb.mxu3 %v3214_v50 }
  0xd5   :  { %856 = vmatpush.msrb.mxu3 %v3257_v11 }
  0xd7   :  { %2992 = vmatmul.msk.f32.gmra.mxu1 %vm79_vm1, %v3260_v12 }
  0xd8   :  { %2983 = vmatmul.msk.f32.gmra.mxu0 %vm79_vm1, %v3245_v2 }
  0xdf   :  { %2993 = vmatmul.msk.f32.gmra.mxu1 %vm79_vm1, %v3284_v23 }
  0xe0   :  { %2984 = vmatmul.msk.f32.gmra.mxu0 %vm79_vm1, %v3260_v12 }
  0xe7   :  { %2994 = vmatmul.msk.f32.gmra.mxu1 %vm79_vm1, %v3297_v34 }
  0xe8   :  { %2985 = vmatmul.msk.f32.gmra.mxu0 %vm79_vm1, %v3284_v23 }
  0xef   :  { %2995 = vmatmul.msk.f32.gmra.mxu1 %vm79_vm1, %v3306_v48 }
  0xf0   :  { %2986 = vmatmul.msk.f32.gmra.mxu0 %vm79_vm1, %v3297_v34 }
  0xf4   :  { %v3382_v44 = vpop.f32.mrf.mxu1 }
  0xf8   :  { %2987 = vmatmul.msk.f32.gmra.mxu0 %vm79_vm1, %v3306_v48 }
  0xfc   :  { %v3386_v45 = vpop.f32.mrf.mxu1 }
  0xfd   :  { %v3388_v51 = vpop.f32.mrf.mxu0  ;;  %v3390_v55 = vpop.f32.mrf.mxu2 }
  0xff   :  { %v3392_v62 = vpop.f32.mrf.mxu3 }
 0x104   :  { %v233_v63 = vpop.f32.mrf.mxu1 }
 0x105   :  { %v3394_v0 = vpop.f32.mrf.mxu0  ;;  %v3396_v2 = vpop.f32.mrf.mxu2 }
 0x107   :  { %v3398_v3 = vpop.f32.mrf.mxu3 }
 0x10c   :  { %v237_v4 = vpop.f32.mrf.mxu1 }
 0x10d   :  { %v149_v5 = vpop.f32.mrf.mxu0  ;;  %v291_v6 = vpop.f32.mrf.mxu2 }
 0x10f   :  { %v354_v7 = vpop.f32.mrf.mxu3 }
 0x114   :  { %v241_v8 = vpop.f32.mrf.mxu1 }
 0x115   :  { %v157_v9 = vpop.f32.mrf.mxu0  ;;  %v296_v10 = vpop.f32.mrf.mxu2 }
 0x117   :  { %v360_v12 = vpop.f32.mrf.mxu3 }
 0x11c   :  { %v245_v14 = vpop.f32.mrf.mxu1 }
 0x11d   :  { %v165_v15 = vpop.f32.mrf.mxu0  ;;  %v301_v16 = vpop.f32.mrf.mxu2 }
 0x11e   :  { %v242_v17 = vadd.f32 %v241_v8, %v165_v15 }
 0x11f   :  { %v366_v19 = vpop.f32.mrf.mxu3 }
 0x120   :  { %v302_v20 = vadd.f32 %v301_v16, %v242_v17 }
 0x122   :  { %v367_v21 = vadd.f32 %v366_v19, %v302_v20 }
 0x124   :  { %v249_v23 = vpop.f32.mrf.mxu1 }
 0x125   :  { %v173_v24 = vpop.f32.mrf.mxu0  ;;  %v306_v25 = vpop.f32.mrf.mxu2 }
 0x126   :  { %v246_v26 = vadd.f32 %v245_v14, %v173_v24  ;;  %v234_v14 = vadd.f32 %v233_v63, %v149_v5 }
 0x127   :  { %v372_v27 = vpop.f32.mrf.mxu3 }
 0x128   :  { %v307_v28 = vadd.f32 %v306_v25, %v246_v26  ;;  %v238_v26 = vadd.f32 %v237_v4, %v157_v9 }
 0x12a   :  { %v373_v32 = vadd.f32 %v372_v27, %v307_v28  ;;  %v297_v5 = vadd.f32 %v296_v10, %v238_v26 }
 0x12c   :  { %v253_v34 = vpop.f32.mrf.mxu1 }
 0x12d   :  { %v181_v37 = vpop.f32.mrf.mxu0  ;;  %v311_v39 = vpop.f32.mrf.mxu2 }
 0x12e   :  { %v250_v42 = vadd.f32 %v249_v23, %v181_v37  ;;  %v292_v23 = vadd.f32 %v291_v6, %v234_v14 }
 0x12f   :  { %v378_v43 = vpop.f32.mrf.mxu3 }
 0x130   :  { %v312_v46 = vadd.f32 %v311_v39, %v250_v42  ;;  %v355_v25 = vadd.f32 %v354_v7, %v292_v23  ;;  %v3409_v42 = vld [vmem:[%s3713_s2 + $0x34] ss:$0 sm:$0xff]  ;;  %v361_v7 = vadd.f32 %v360_v12, %v297_v5  ;;  %v226_v12 = vadd.f32 %v3382_v44, %v3388_v51 }
 0x132   :  { %v379_v47 = vadd.f32 %v378_v43, %v312_v46 }
 0x134   :  { %v466_v48 = vpop.f32.mrf.mxu1 }
 0x135   :  { %v189_v49 = vpop.f32.mrf.mxu0  ;;  %v316_v52 = vpop.f32.mrf.mxu2 }
 0x136   :  { %v254_v53 = vadd.f32 %v253_v34, %v189_v49 }
 0x137   :  { %v384_v56 = vpop.f32.mrf.mxu3 }
 0x138   :  { %v317_v57 = vadd.f32 %v316_v52, %v254_v53 }
 0x13a   :  { %v3400_v40 = vadd.f32 %v384_v56, %v317_v57 }
 0x13c   :  { %v3402_v58 = vpop.f32.mrf.mxu1 }
 0x13d   :  { %v414_v60 = vpop.f32.mrf.mxu0  ;;  %v532_v61 = vpop.f32.mrf.mxu2 }
 0x13f   :  { %v573_v8 = vpop.f32.mrf.mxu3 }
 0x140   :  { %v574_v17 = vadd.f32 %v573_v8, %v532_v61 }
 0x144   :  { %v474_v19 = vpop.f32.mrf.mxu1 }
 0x145   :  { %v3404_v15 = vpop.f32.mrf.mxu0  ;;  %v603_v16 = vpop.f32.mrf.mxu2 }
 0x146   :  { %v604_v24 = vadd.f32 %v603_v16, %v574_v17 }
 0x147   :  { %v630_v20 = vpop.f32.mrf.mxu3 }
 0x148   :  { %v631_v27 = vadd.f32 %v630_v20, %v604_v24  ;;  %v282_v24 = vadd.f32 %v3390_v55, %v226_v12 }
 0x14c   :  { %v478_v49 = vpop.f32.mrf.mxu1 }
 0x14d   :  { %v422_v28 = vpop.f32.mrf.mxu0 }
 0x14e   :  { %v663_v34 = vpop.f32.mrf.mxu2  ;;  %v423_v37 = vadd.f32 %v422_v28, %v355_v25  ;;  %v343_v25 = vadd.f32 %v3392_v62, %v282_v24 }
 0x14f   :  { %v664_v39 = vadd.f32 %v663_v34, %v631_v27  ;;  %v688_v63 = vpop.f32.mrf.mxu3 }
 0x150   :  { %v3411_v43 = vadd.f32 %v474_v19, %v423_v37 }
 0x151   :  { %v689_v46 = vadd.f32 %v688_v63, %v664_v39 }
 0x153   :  { %v712_v6 = vadd.f32 %v3409_v42, %v689_v46 }
 0x154   :  { %v482_v53 = vpop.f32.mrf.mxu1 }
 0x155   :  { %714 = vrot.lane.b32.xlu2 %v712_v6, %s3100_s20  ;;  %v426_v4 = vpop.f32.mrf.mxu0 }
 0x156   :  { %v427_v9 = vadd.f32 %v426_v4, %v361_v7 }
 0x158   :  { %v3415_v52 = vadd.f32 %v478_v49, %v427_v9 }
 0x15c   :  { %v486_v10 = vpop.f32.mrf.mxu1 }
 0x15d   :  { %v430_v56 = vpop.f32.mrf.mxu0 }
 0x15e   :  { %v431_v57 = vadd.f32 %v430_v56, %v367_v21  ;;  %v415_v21 = vadd.f32 %v414_v60, %v343_v25 }
 0x160   :  { %v3417_v61 = vadd.f32 %v482_v53, %v431_v57  ;;  %v467_v26 = vadd.f32 %v466_v48, %v415_v21 }
 0x162   :  { %v691_v27 = vadd.f32 %v689_v46, %v467_v26 }
 0x164   :  { %v490_v20 = vpop.f32.mrf.mxu1  ;;  %v2996_v28 = vmul.f32 -1.442695, %v691_v27 }
 0x165   :  { %v434_v8 = vpop.f32.mrf.mxu0 }
 0x166   :  { %v435_v14 = vadd.f32 %v434_v8, %v373_v32  ;;  %3019 = vpow2.f32 %v2996_v28 }
 0x168   :  { %v3419_v16 = vadd.f32 %v486_v10, %v435_v14 }
 0x16c   :  { %v3020_v32 = vpop.eup %3019 }
 0x16d   :  { %v438_v17 = vpop.f32.mrf.mxu0  ;;  %v695_v34 = vadd.f32 1.0, %v3020_v32 }
 0x16e   :  { %v439_v19 = vadd.f32 %v438_v17, %v379_v47 }
 0x16f   :  { %3021 = vrcp.f32 %v695_v34  ;;  %v707_v63 = vand.u32 2147483648, %v695_v34  ;;  %vm701_vm11 = vweird.f32 %v695_v34  ;;  %v705_v5 = vand.u32 2147483647, %v695_v34 }
 0x170   :  { %v3423_v23 = vadd.f32 %v490_v20, %v439_v19 }
 0x171   :  { %v708_v62 = vor.u32 1.1754944e-38, %v707_v63  ;;  %vm706_vm13 = vcmp.eq.f32.partialorder %v705_v5, 8.507059e+37 }
 0x175   :  { %v3022_v37 = vpop.eup %3021 }
 0x176   :  { %v697_v39 = vmul.f32 %v3022_v37, %v695_v34  ;;  %vm702_vm10 = vweird.f32 %v3022_v37 }
 0x177   :  { %vm703_vm12 = vmor %vm701_vm11, %vm702_vm10 }
 0x178   :  { %v698_v44 = vsub.f32 1.0, %v697_v39 }
 0x17a   :  { %v699_v51 = vmul.f32 %v3022_v37, %v698_v44 }
 0x17c   :  { %v700_v47 = vadd.f32 %v3022_v37, %v699_v51 }
 0x17e   :  { %v704_v55 = vsel %vm703_vm12, %v3022_v37, %v700_v47  ;;  %v230_v47 = vadd.f32 %v3386_v45, %v3394_v0 }
 0x17f   :  { %v709_v60 = vsel %vm706_vm13, %v708_v62, %v704_v55 }
 0x180   :  { %v724_v4 = vsub.f32 1.0, %v709_v60  ;;  %v730_v53 = vmul.f32 0.0, %v709_v60  ;;  %v287_v63 = vadd.f32 %v3396_v2, %v230_v47 }
 0x182   :  { %v349_v5 = vadd.f32 %v3398_v3, %v287_v63 }
 0x184   :  { %v419_v55 = vadd.f32 %v3404_v15, %v349_v5 }
 0x186   :  { %v471_v62 = vadd.f32 %v3402_v58, %v419_v55 }
 0x1af   :  { %v715_v48 = vpop.permute.xlu2 %714 }
 0x1b0   :  { %v717_v46 = vmul.f32 %v715_v48, %v709_v60 }
 0x1b2   :  { %719 = vrot.lane.b32.xlu0 %v717_v46, %s3100_s20 }
 0x224   :  { %v720_v49 = vpop.permute.xlu0 %719 }
 0x225   :  { %v722_v6 = vadd.f32 %v720_v49, %v467_v26 }
 0x227   :  { %3023 = vtanh.f32 %v722_v6 }
 0x22d   :  { %v3024_v7 = vpop.eup %3023 }
 0x22e   :  { %726 = vrot.lane.b32.xlu1 %v3024_v7, %s3101_s21 }
 0x2a0   :  { %v727_v9 = vpop.permute.xlu1 %726 }
 0x2a1   :  { %v729_v56 = vmul.f32 %v727_v9, %v724_v4 }
 0x2a3   :  { %v3429_v57 = vadd.f32 %v730_v53, %v729_v56 }
 0x2a5   :  { %733 = vrot.lane.b32.xlu2 %v3429_v57, %s3101_s21 }
 0x2ff   :  { %v734_v10 = vpop.permute.xlu2 %733 }
 0x300   :  { %v735_v8 = vsel %vm502_vm14, %v734_v10, 0 }
 0x301   :  { %v757_v14 = vand.u32 4294901760, %v735_v8 }
 0x303   :  { %v758_v12 = vsub.f32 %v735_v8, %v757_v14  ;;  %803 = vmatmul.f32.vlgmr.msra.gmra.mxu3 %v757_v14 }
 0x304   :  { %910 = vmatpush.msra.mxu3 %v3167_v29 }
 0x305   :  { %v759_v17 = vand.u32 4294901760, %v758_v12 }
 0x306   :  { %912 = vmatpush.msra.mxu3 %v3184_v35 }
 0x307   :  { %v760_v19 = vsub.f32 %v758_v12, %v759_v17 }
 0x308   :  { %914 = vmatpush.msra.mxu3 %v3214_v50 }
 0x309   :  { %v761_v20 = vand.u32 4294901760, %v760_v19 }
 0x30a   :  { %916 = vmatpush.msra.mxu3 %v3257_v11 }
 0x30b   :  { %762 = vmatmul.f32.vlgmr.msra.gmra.mxu2 %v761_v20  ;;  %860 = vmatmul.f32.vlgmr.msrb.gmra.mxu3 %v759_v17 }
 0x30c   :  { %879 = vmatpush.msra.mxu2 %v3174_v31  ;;  %1013 = vmatpush.msrb.mxu3 %v3178_v33 }
 0x30e   :  { %883 = vmatpush.msra.mxu2 %v3191_v38  ;;  %1019 = vmatpush.msrb.mxu3 %v3197_v41 }
 0x310   :  { %887 = vmatpush.msra.mxu2 %v3235_v59  ;;  %1025 = vmatpush.msrb.mxu3 %v3241_v1 }
 0x312   :  { %891 = vmatpush.msra.mxu2 %v3273_v18  ;;  %1031 = vmatpush.msrb.mxu3 %v3280_v22 }
 0x313   :  { %833 = vmatmul.f32.vlgmr.msrb.gmra.mxu2 %v758_v12  ;;  %918 = vmatmul.f32.vlgmr.msra.gmra.mxu3 %v757_v14 }
 0x314   :  { %980 = vmatpush.msrb.mxu2 %v3167_v29  ;;  %1080 = vmatpush.msra.mxu3 %v3167_v29 }
 0x316   :  { %982 = vmatpush.msrb.mxu2 %v3184_v35  ;;  %1082 = vmatpush.msra.mxu3 %v3184_v35 }
 0x318   :  { %984 = vmatpush.msrb.mxu2 %v3214_v50  ;;  %1084 = vmatpush.msra.mxu3 %v3214_v50 }
 0x31a   :  { %986 = vmatpush.msrb.mxu2 %v3257_v11  ;;  %1086 = vmatpush.msra.mxu3 %v3257_v11 }
 0x31b   :  { %893 = vmatmul.f32.vlgmr.msra.gmra.mxu2 %v757_v14 }
 0x31c   :  { %1051 = vmatpush.msra.mxu2 %v3171_v30 }
 0x31e   :  { %1054 = vmatpush.msra.mxu2 %v3188_v36 }
 0x320   :  { %1057 = vmatpush.msra.mxu2 %v3222_v54 }
 0x322   :  { %1060 = vmatpush.msra.mxu2 %v3264_v13 }
 0x386   :  { %v804_v24 = vpop.f32.mrf.mxu3 }
 0x38e   :  { %v763_v25 = vpop.f32.mrf.mxu2  ;;  %v861_v21 = vpop.f32.mrf.mxu3 }
 0x38f   :  { %v805_v27 = vadd.f32 %v804_v24, %v763_v25 }
 0x396   :  { %v834_v26 = vpop.f32.mrf.mxu2  ;;  %v919_v39 = vpop.f32.mrf.mxu3 }
 0x397   :  { %v835_v28 = vadd.f32 %v834_v26, %v805_v27 }
 0x399   :  { %v862_v32 = vadd.f32 %v861_v21, %v835_v28 }
 0x39e   :  { %v894_v34 = vpop.f32.mrf.mxu2 }
 0x39f   :  { %v895_v37 = vadd.f32 %v894_v34, %v862_v32 }
 0x3a1   :  { %v920_v44 = vadd.f32 %v919_v39, %v895_v37  ;;  %v3498_v39 = vpop.f32.mrf.mxu0 }
 0x3a3   :  { %v942_v51 = vadd.f32 %v3409_v42, %v920_v44  ;;  %v922_v48 = vadd.f32 %v920_v44, %v471_v62  ;;  %v3500_v44 = vpop.f32.mrf.mxu1 }
 0x3a5   :  { %944 = vrot.lane.b32.xlu0 %v942_v51, %s3100_s20  ;;  %v2997_v60 = vmul.f32 -1.442695, %v922_v48 }
 0x3a7   :  { %3025 = vpow2.f32 %v2997_v60 }
 0x3ad   :  { %v3026_v46 = vpop.eup %3025 }
 0x3ae   :  { %v926_v49 = vadd.f32 1.0, %v3026_v46 }
 0x3b0   :  { %3027 = vrcp.f32 %v926_v49  ;;  %v938_v45 = vand.u32 2147483648, %v926_v49  ;;  %vm932_vm1 = vweird.f32 %v926_v49  ;;  %v936_v0 = vand.u32 2147483647, %v926_v49 }
 0x3b2   :  { %v939_v3 = vor.u32 1.1754944e-38, %v938_v45  ;;  %vm937_vm3 = vcmp.eq.f32.partialorder %v936_v0, 8.507059e+37 }
 0x3b6   :  { %v3028_v6 = vpop.eup %3027 }
 0x3b7   :  { %v928_v7 = vmul.f32 %v3028_v6, %v926_v49  ;;  %vm933_vm15 = vweird.f32 %v3028_v6 }
 0x3b8   :  { %vm934_vm2 = vmor %vm932_vm1, %vm933_vm15 }
 0x3b9   :  { %v929_v4 = vsub.f32 1.0, %v928_v7 }
 0x3bb   :  { %v930_v9 = vmul.f32 %v3028_v6, %v929_v4 }
 0x3bd   :  { %v931_v53 = vadd.f32 %v3028_v6, %v930_v9 }
 0x3bf   :  { %v935_v2 = vsel %vm934_vm2, %v3028_v6, %v931_v53 }
 0x3c0   :  { %v940_v15 = vsel %vm937_vm3, %v939_v3, %v935_v2 }
 0x3c1   :  { %v954_v12 = vsub.f32 1.0, %v940_v15  ;;  %v960_v19 = vmul.f32 %v940_v15, %v3429_v57 }
 0x417   :  { %v945_v58 = vpop.permute.xlu0 %944 }
 0x418   :  { %v947_v56 = vmul.f32 %v945_v58, %v940_v15 }
 0x41a   :  { %949 = vrot.lane.b32.xlu1 %v947_v56, %s3100_s20 }
 0x48c   :  { %v950_v10 = vpop.permute.xlu1 %949 }
 0x48d   :  { %v952_v8 = vadd.f32 %v950_v10, %v471_v62 }
 0x48f   :  { %3029 = vtanh.f32 %v952_v8 }
 0x495   :  { %v3030_v14 = vpop.eup %3029 }
 0x496   :  { %956 = vrot.lane.b32.xlu2 %v3030_v14, %s3101_s21 }
 0x4f0   :  { %v957_v17 = vpop.permute.xlu2 %956 }
 0x4f1   :  { %v959_v20 = vmul.f32 %v957_v17, %v954_v12 }
 0x4f3   :  { %v3469_v24 = vadd.f32 %v960_v19, %v959_v20 }
 0x4f5   :  { %963 = vrot.lane.b32.xlu0 %v3469_v24, %s3101_s21 }
 0x567   :  { %v964_v25 = vpop.permute.xlu0 %963 }
 0x568   :  { %v965_v21 = vsel %vm502_vm14, %v964_v25, 0 }
 0x569   :  { %v987_v26 = vand.u32 4294901760, %v965_v21 }
 0x56b   :  { %v988_v27 = vsub.f32 %v965_v21, %v987_v26  ;;  %1033 = vmatmul.f32.vlgmr.msrb.gmra.mxu3 %v987_v26  ;;  %1123 = vmatmul.f32.vlgmr.msra.gmra.mxu0 %v987_v26 }
 0x56c   :  { %1148 = vmatmul.f32.vlgmr.msra.gmra.mxu1 %v987_v26  ;;  %1243 = vmatpush.msrb.mxu3 %v3178_v33 }
 0x56d   :  { %v989_v28 = vand.u32 4294901760, %v988_v27  ;;  %1473 = vmatpush.msra.mxu1 %v3178_v33  ;;  %1440 = vmatpush.msra.mxu0 %v3167_v29 }
 0x56e   :  { %1249 = vmatpush.msrb.mxu3 %v3197_v41 }
 0x56f   :  { %v990_v57 = vsub.f32 %v988_v27, %v989_v28  ;;  %1479 = vmatpush.msra.mxu1 %v3197_v41  ;;  %1442 = vmatpush.msra.mxu0 %v3184_v35 }
 0x570   :  { %1255 = vmatpush.msrb.mxu3 %v3241_v1 }
 0x571   :  { %v991_v32 = vand.u32 4294901760, %v990_v57  ;;  %1485 = vmatpush.msra.mxu1 %v3241_v1  ;;  %1444 = vmatpush.msra.mxu0 %v3214_v50 }
 0x572   :  { %1261 = vmatpush.msrb.mxu3 %v3280_v22 }
 0x573   :  { %992 = vmatmul.f32.vlgmr.msrb.gmra.mxu2 %v991_v32  ;;  %1090 = vmatmul.f32.vlgmr.msra.gmra.mxu3 %v989_v28 }
 0x574   :  { %1210 = vmatpush.msrb.mxu2 %v3167_v29  ;;  %1370 = vmatpush.msra.mxu3 %v3167_v29 }
 0x575   :  { %1491 = vmatpush.msra.mxu1 %v3280_v22  ;;  %1446 = vmatpush.msra.mxu0 %v3257_v11 }
 0x576   :  { %1212 = vmatpush.msrb.mxu2 %v3184_v35  ;;  %1372 = vmatpush.msra.mxu3 %v3184_v35 }
 0x578   :  { %1214 = vmatpush.msrb.mxu2 %v3214_v50  ;;  %1374 = vmatpush.msra.mxu3 %v3214_v50 }
 0x57a   :  { %1216 = vmatpush.msrb.mxu2 %v3257_v11  ;;  %1376 = vmatpush.msra.mxu3 %v3257_v11 }
 0x57b   :  { %1063 = vmatmul.f32.vlgmr.msra.gmra.mxu2 %v988_v27 }
 0x57c   :  { %1339 = vmatpush.msra.mxu2 %v3174_v31 }
 0x57e   :  { %1343 = vmatpush.msra.mxu2 %v3191_v38 }
 0x580   :  { %1347 = vmatpush.msra.mxu2 %v3235_v59 }
 0x582   :  { %1351 = vmatpush.msra.mxu2 %v3273_v18 }
 0x5e8   :  { %v1124_v62 = vpop.f32.mrf.mxu0 }
 0x5e9   :  { %v1149_v60 = vpop.f32.mrf.mxu1 }
 0x5ee   :  { %v1034_v34 = vpop.f32.mrf.mxu3 }
 0x5f6   :  { %v993_v37 = vpop.f32.mrf.mxu2  ;;  %v1091_v5 = vpop.f32.mrf.mxu3 }
 0x5f7   :  { %v1035_v51 = vadd.f32 %v1034_v34, %v993_v37 }
 0x5fe   :  { %v1064_v47 = vpop.f32.mrf.mxu2 }
 0x5ff   :  { %v1065_v63 = vadd.f32 %v1064_v47, %v1035_v51 }
 0x601   :  { %v1092_v55 = vadd.f32 %v1091_v5, %v1065_v63 }
 0x603   :  { %v1125_v48 = vadd.f32 %v1124_v62, %v1092_v55 }
 0x605   :  { %v1150_v46 = vadd.f32 %v1149_v60, %v1125_v48 }
 0x607   :  { %v1172_v49 = vadd.f32 %v3409_v42, %v1150_v46  ;;  %v1152_v6 = vadd.f32 %v1150_v46, %v3411_v43 }
 0x609   :  { %1174 = vrot.lane.b32.xlu1 %v1172_v49, %s3100_s20  ;;  %v2998_v7 = vmul.f32 -1.442695, %v1152_v6 }
 0x60b   :  { %3031 = vpow2.f32 %v2998_v7 }
 0x611   :  { %v3032_v4 = vpop.eup %3031 }
 0x612   :  { %v1156_v9 = vadd.f32 1.0, %v3032_v4 }
 0x614   :  { %3033 = vrcp.f32 %v1156_v9  ;;  %v1168_v58 = vand.u32 2147483648, %v1156_v9  ;;  %vm1162_vm5 = vweird.f32 %v1156_v9  ;;  %v1166_v15 = vand.u32 2147483647, %v1156_v9 }
 0x616   :  { %v1169_v10 = vor.u32 1.1754944e-38, %v1168_v58  ;;  %vm1167_vm7 = vcmp.eq.f32.partialorder %v1166_v15, 8.507059e+37 }
 0x61a   :  { %v3034_v53 = vpop.eup %3033 }
 0x61b   :  { %v1158_v45 = vmul.f32 %v3034_v53, %v1156_v9  ;;  %vm1163_vm4 = vweird.f32 %v3034_v53 }
 0x61c   :  { %vm1164_vm6 = vmor %vm1162_vm5, %vm1163_vm4 }
 0x61d   :  { %v1159_v0 = vsub.f32 1.0, %v1158_v45 }
 0x61f   :  { %v1160_v2 = vmul.f32 %v3034_v53, %v1159_v0 }
 0x621   :  { %v1161_v3 = vadd.f32 %v3034_v53, %v1160_v2 }
 0x623   :  { %v1165_v56 = vsel %vm1164_vm6, %v3034_v53, %v1161_v3 }
 0x624   :  { %v1170_v14 = vsel %vm1167_vm7, %v1169_v10, %v1165_v56 }
 0x625   :  { %v1184_v25 = vsub.f32 1.0, %v1170_v14  ;;  %v1190_v26 = vmul.f32 %v1170_v14, %v3469_v24 }
 0x67b   :  { %v1175_v8 = vpop.permute.xlu1 %1174 }
 0x67c   :  { %v1177_v12 = vmul.f32 %v1175_v8, %v1170_v14 }
 0x67e   :  { %1179 = vrot.lane.b32.xlu2 %v1177_v12, %s3100_s20 }
 0x6d8   :  { %v1180_v17 = vpop.permute.xlu2 %1179 }
 0x6d9   :  { %v1182_v19 = vadd.f32 %v1180_v17, %v3411_v43 }
 0x6db   :  { %3035 = vtanh.f32 %v1182_v19 }
 0x6e1   :  { %v3036_v20 = vpop.eup %3035 }
 0x6e2   :  { %1186 = vrot.lane.b32.xlu0 %v3036_v20, %s3101_s21 }
 0x754   :  { %v1187_v21 = vpop.permute.xlu0 %1186 }
 0x755   :  { %v1189_v27 = vmul.f32 %v1187_v21, %v1184_v25 }
 0x757   :  { %v3509_v28 = vadd.f32 %v1190_v26, %v1189_v27 }
 0x759   :  { %1193 = vrot.lane.b32.xlu1 %v3509_v28, %s3101_s21 }
 0x7cb   :  { %v1194_v57 = vpop.permute.xlu1 %1193 }
 0x7cc   :  { %v1195_v32 = vsel %vm502_vm14, %v1194_v57, 0 }
 0x7cd   :  { %v1217_v34 = vand.u32 4294901760, %v1195_v32 }
 0x7cf   :  { %v1218_v37 = vsub.f32 %v1195_v32, %v1217_v34  ;;  %1263 = vmatmul.f32.vlgmr.msrb.gmra.mxu3 %v1217_v34 }
 0x7d0   :  { %1540 = vmatpush.msrb.mxu3 %v3167_v29 }
 0x7d1   :  { %v1219_v43 = vand.u32 4294901760, %v1218_v37  ;;  %1293 = vmatmul.f32.vlgmr.msrb.gmra.mxu0 %v1218_v37 }
 0x7d2   :  { %1542 = vmatpush.msrb.mxu3 %v3184_v35  ;;  %1569 = vmatpush.msrb.mxu0 %v3174_v31 }
 0x7d3   :  { %v1220_v24 = vsub.f32 %v1218_v37, %v1219_v43  ;;  %1320 = vmatmul.f32.vlgmr.msrb.gmra.mxu1 %v1219_v43 }
 0x7d4   :  { %1544 = vmatpush.msrb.mxu3 %v3214_v50  ;;  %1600 = vmatpush.msrb.mxu1 %v3167_v29 }
 0x7d5   :  { %v1221_v51 = vand.u32 4294901760, %v1220_v24  ;;  %1573 = vmatpush.msrb.mxu0 %v3191_v38 }
 0x7d6   :  { %1546 = vmatpush.msrb.mxu3 %v3257_v11  ;;  %1602 = vmatpush.msrb.mxu1 %v3184_v35 }
 0x7d7   :  { %1222 = vmatmul.f32.vlgmr.msrb.gmra.mxu2 %v1221_v51  ;;  %1378 = vmatmul.f32.vlgmr.msra.gmra.mxu3 %v1217_v34 }
 0x7d8   :  { %1511 = vmatpush.msrb.mxu2 %v3171_v30  ;;  %1604 = vmatpush.msrb.mxu1 %v3214_v50 }
 0x7d9   :  { %1577 = vmatpush.msrb.mxu0 %v3235_v59  ;;  %1703 = vmatpush.msra.mxu3 %v3178_v33 }
 0x7da   :  { %1514 = vmatpush.msrb.mxu2 %v3188_v36  ;;  %1606 = vmatpush.msrb.mxu1 %v3257_v11 }
 0x7db   :  { %1581 = vmatpush.msrb.mxu0 %v3273_v18  ;;  %1709 = vmatpush.msra.mxu3 %v3197_v41 }
 0x7dc   :  { %1517 = vmatpush.msrb.mxu2 %v3222_v54 }
 0x7dd   :  { %1715 = vmatpush.msra.mxu3 %v3241_v1 }
 0x7de   :  { %1520 = vmatpush.msrb.mxu2 %v3264_v13 }
 0x7df   :  { %1353 = vmatmul.f32.vlgmr.msra.gmra.mxu2 %v1217_v34  ;;  %1721 = vmatpush.msra.mxu3 %v3280_v22 }
 0x7e0   :  { %1670 = vmatpush.msra.mxu2 %v3167_v29 }
 0x7e2   :  { %1672 = vmatpush.msra.mxu2 %v3184_v35 }
 0x7e4   :  { %1674 = vmatpush.msra.mxu2 %v3214_v50 }
 0x7e6   :  { %1676 = vmatpush.msra.mxu2 %v3257_v11 }
 0x84e   :  { %v1294_v55 = vpop.f32.mrf.mxu0 }
 0x850   :  { %v1321_v48 = vpop.f32.mrf.mxu1 }
 0x852   :  { %v1264_v47 = vpop.f32.mrf.mxu3 }
 0x85a   :  { %v1223_v63 = vpop.f32.mrf.mxu2  ;;  %v1379_v6 = vpop.f32.mrf.mxu3 }
 0x85b   :  { %v1265_v5 = vadd.f32 %v1264_v47, %v1223_v63 }
 0x85d   :  { %v1295_v62 = vadd.f32 %v1294_v55, %v1265_v5 }
 0x85f   :  { %v1322_v60 = vadd.f32 %v1321_v48, %v1295_v62 }
 0x862   :  { %v1354_v46 = vpop.f32.mrf.mxu2 }
 0x863   :  { %v1355_v49 = vadd.f32 %v1354_v46, %v1322_v60 }
 0x865   :  { %v1380_v7 = vadd.f32 %v1379_v6, %v1355_v49 }
 0x867   :  { %v1402_v4 = vadd.f32 %v3409_v42, %v1380_v7  ;;  %v1382_v9 = vadd.f32 %v1380_v7, %v3415_v52 }
 0x869   :  { %1404 = vrot.lane.b32.xlu2 %v1402_v4, %s3100_s20  ;;  %v2999_v53 = vmul.f32 -1.442695, %v1382_v9 }
 0x86b   :  { %3037 = vpow2.f32 %v2999_v53 }
 0x871   :  { %v3038_v45 = vpop.eup %3037 }
 0x872   :  { %v1386_v0 = vadd.f32 1.0, %v3038_v45 }
 0x874   :  { %3039 = vrcp.f32 %v1386_v0  ;;  %v1398_v10 = vand.u32 2147483648, %v1386_v0  ;;  %vm1392_vm9 = vweird.f32 %v1386_v0  ;;  %v1396_v8 = vand.u32 2147483647, %v1386_v0 }
 0x876   :  { %v1399_v12 = vor.u32 1.1754944e-38, %v1398_v10  ;;  %vm1397_vm11 = vcmp.eq.f32.partialorder %v1396_v8, 8.507059e+37 }
 0x87a   :  { %v3040_v2 = vpop.eup %3039 }
 0x87b   :  { %v1388_v3 = vmul.f32 %v3040_v2, %v1386_v0  ;;  %vm1393_vm8 = vweird.f32 %v3040_v2 }
 0x87c   :  { %vm1394_vm10 = vmor %vm1392_vm9, %vm1393_vm8 }
 0x87d   :  { %v1389_v58 = vsub.f32 1.0, %v1388_v3 }
 0x87f   :  { %v1390_v15 = vmul.f32 %v3040_v2, %v1389_v58 }
 0x881   :  { %v1391_v56 = vadd.f32 %v3040_v2, %v1390_v15 }
 0x883   :  { %v1395_v14 = vsel %vm1394_vm10, %v3040_v2, %v1391_v56 }
 0x884   :  { %v1400_v19 = vsel %vm1397_vm11, %v1399_v12, %v1395_v14 }
 0x885   :  { %v1414_v27 = vsub.f32 1.0, %v1400_v19  ;;  %v1420_v32 = vmul.f32 %v1400_v19, %v3509_v28 }
 0x8c3   :  { %v1405_v17 = vpop.permute.xlu2 %1404 }
 0x8c4   :  { %v1407_v20 = vmul.f32 %v1405_v17, %v1400_v19 }
 0x8c6   :  { %1409 = vrot.lane.b32.xlu0 %v1407_v20, %s3100_s20 }
 0x938   :  { %v1410_v25 = vpop.permute.xlu0 %1409 }
 0x939   :  { %v1412_v21 = vadd.f32 %v1410_v25, %v3415_v52 }
 0x93b   :  { %3041 = vtanh.f32 %v1412_v21 }
 0x941   :  { %v3042_v26 = vpop.eup %3041 }
 0x942   :  { %1416 = vrot.lane.b32.xlu1 %v3042_v26, %s3101_s21 }
 0x9b4   :  { %v1417_v57 = vpop.permute.xlu1 %1416 }
 0x9b5   :  { %v1419_v34 = vmul.f32 %v1417_v57, %v1414_v27 }
 0x9b7   :  { %v3545_v37 = vadd.f32 %v1420_v32, %v1419_v34 }
 0x9b9   :  { %1423 = vrot.lane.b32.xlu2 %v3545_v37, %s3101_s21 }
 0xa13   :  { %v1424_v43 = vpop.permute.xlu2 %1423 }
 0xa14   :  { %v1425_v24 = vsel %vm502_vm14, %v1424_v43, 0 }
 0xa15   :  { %v1447_v51 = vand.u32 4294901760, %v1425_v24 }
 0xa17   :  { %v1448_v47 = vsub.f32 %v1425_v24, %v1447_v51  ;;  %1493 = vmatmul.f32.vlgmr.msra.gmra.mxu1 %v1447_v51 }
 0xa18   :  { %1770 = vmatpush.msra.mxu1 %v3167_v29 }
 0xa19   :  { %v1449_v52 = vand.u32 4294901760, %v1448_v47  ;;  %1523 = vmatmul.f32.vlgmr.msrb.gmra.mxu2 %v1448_v47 }
 0xa1a   :  { %1772 = vmatpush.msra.mxu1 %v3184_v35  ;;  %1799 = vmatpush.msrb.mxu2 %v3174_v31 }
 0xa1b   :  { %v1450_v28 = vsub.f32 %v1448_v47, %v1449_v52  ;;  %1550 = vmatmul.f32.vlgmr.msrb.gmra.mxu3 %v1449_v52 }
 0xa1c   :  { %1774 = vmatpush.msra.mxu1 %v3214_v50  ;;  %1830 = vmatpush.msrb.mxu3 %v3167_v29 }
 0xa1d   :  { %v1451_v63 = vand.u32 4294901760, %v1450_v28  ;;  %1803 = vmatpush.msrb.mxu2 %v3191_v38 }
 0xa1e   :  { %1776 = vmatpush.msra.mxu1 %v3257_v11  ;;  %1832 = vmatpush.msrb.mxu3 %v3184_v35 }
 0xa1f   :  { %1452 = vmatmul.f32.vlgmr.msra.gmra.mxu0 %v1451_v63  ;;  %1608 = vmatmul.f32.vlgmr.msrb.gmra.mxu1 %v1447_v51 }
 0xa20   :  { %1741 = vmatpush.msra.mxu0 %v3171_v30  ;;  %1834 = vmatpush.msrb.mxu3 %v3214_v50 }
 0xa21   :  { %1807 = vmatpush.msrb.mxu2 %v3235_v59  ;;  %1933 = vmatpush.msrb.mxu1 %v3178_v33 }
 0xa22   :  { %1744 = vmatpush.msra.mxu0 %v3188_v36  ;;  %1836 = vmatpush.msrb.mxu3 %v3257_v11 }
 0xa23   :  { %1811 = vmatpush.msrb.mxu2 %v3273_v18  ;;  %1939 = vmatpush.msrb.mxu1 %v3197_v41 }
 0xa24   :  { %1747 = vmatpush.msra.mxu0 %v3222_v54 }
 0xa25   :  { %1945 = vmatpush.msrb.mxu1 %v3241_v1 }
 0xa26   :  { %1750 = vmatpush.msra.mxu0 %v3264_v13 }
 0xa27   :  { %1583 = vmatmul.f32.vlgmr.msrb.gmra.mxu0 %v1447_v51  ;;  %1951 = vmatpush.msrb.mxu1 %v3280_v22 }
 0xa28   :  { %1900 = vmatpush.msrb.mxu0 %v3167_v29 }
 0xa2a   :  { %1902 = vmatpush.msrb.mxu0 %v3184_v35 }
 0xa2c   :  { %1904 = vmatpush.msrb.mxu0 %v3214_v50 }
 0xa2e   :  { %1906 = vmatpush.msrb.mxu0 %v3257_v11 }
 0xa94   :  { %v1494_v5 = vpop.f32.mrf.mxu1 }
 0xa9c   :  { %v1453_v55 = vpop.f32.mrf.mxu0  ;;  %v1524_v48 = vpop.f32.mrf.mxu2 }
 0xa9d   :  { %v1495_v62 = vadd.f32 %v1494_v5, %v1453_v55  ;;  %v1609_v4 = vpop.f32.mrf.mxu1 }
 0xa9e   :  { %v1551_v46 = vpop.f32.mrf.mxu3 }
 0xa9f   :  { %v1525_v60 = vadd.f32 %v1524_v48, %v1495_v62 }
 0xaa1   :  { %v1552_v49 = vadd.f32 %v1551_v46, %v1525_v60 }
 0xaa4   :  { %v1584_v6 = vpop.f32.mrf.mxu0 }
 0xaa5   :  { %v1585_v7 = vadd.f32 %v1584_v6, %v1552_v49 }
 0xaa7   :  { %v1610_v9 = vadd.f32 %v1609_v4, %v1585_v7 }
 0xaa9   :  { %v1632_v53 = vadd.f32 %v3409_v42, %v1610_v9  ;;  %v1612_v45 = vadd.f32 %v1610_v9, %v3417_v61 }
 0xaab   :  { %1634 = vrot.lane.b32.xlu0 %v1632_v53, %s3100_s20  ;;  %v3000_v0 = vmul.f32 -1.442695, %v1612_v45 }
 0xaad   :  { %3043 = vpow2.f32 %v3000_v0 }
 0xab3   :  { %v3044_v2 = vpop.eup %3043 }
 0xab4   :  { %v1616_v3 = vadd.f32 1.0, %v3044_v2 }
 0xab6   :  { %3045 = vrcp.f32 %v1616_v3  ;;  %v1628_v14 = vand.u32 2147483648, %v1616_v3  ;;  %vm1622_vm13 = vweird.f32 %v1616_v3  ;;  %v1626_v12 = vand.u32 2147483647, %v1616_v3 }
 0xab8   :  { %v1629_v19 = vor.u32 1.1754944e-38, %v1628_v14  ;;  %vm1627_vm1 = vcmp.eq.f32.partialorder %v1626_v12, 8.507059e+37 }
 0xabc   :  { %v3046_v58 = vpop.eup %3045 }
 0xabd   :  { %v1618_v15 = vmul.f32 %v3046_v58, %v1616_v3  ;;  %vm1623_vm12 = vweird.f32 %v3046_v58 }
 0xabe   :  { %vm1624_vm15 = vmor %vm1622_vm13, %vm1623_vm12 }
 0xabf   :  { %v1619_v56 = vsub.f32 1.0, %v1618_v15 }
 0xac1   :  { %v1620_v10 = vmul.f32 %v3046_v58, %v1619_v56 }
 0xac3   :  { %v1621_v8 = vadd.f32 %v3046_v58, %v1620_v10 }
 0xac5   :  { %v1625_v17 = vsel %vm1624_vm15, %v3046_v58, %v1621_v8  ;;  %vm2559_vm15 = vcmask 1042432  }
 0xac6   :  { %v1630_v25 = vsel %vm1627_vm1, %v1629_v19, %v1625_v17  ;;  %vm2555_vm1 = vcmask 23552  }
 0xac7   :  { %v1644_v32 = vsub.f32 1.0, %v1630_v25  ;;  %v1650_v43 = vmul.f32 %v1630_v25, %v3545_v37 }
 0xb1d   :  { %v1635_v20 = vpop.permute.xlu0 %1634 }
 0xb1e   :  { %v1637_v21 = vmul.f32 %v1635_v20, %v1630_v25 }
 0xb20   :  { %1639 = vrot.lane.b32.xlu1 %v1637_v21, %s3100_s20 }
 0xb92   :  { %v1640_v26 = vpop.permute.xlu1 %1639 }
 0xb93   :  { %v1642_v27 = vadd.f32 %v1640_v26, %v3417_v61 }
 0xb95   :  { %3047 = vtanh.f32 %v1642_v27 }
 0xb9b   :  { %v3048_v57 = vpop.eup %3047 }
 0xb9c   :  { %1646 = vrot.lane.b32.xlu2 %v3048_v57, %s3101_s21 }
 0xbf6   :  { %v1647_v34 = vpop.permute.xlu2 %1646 }
 0xbf7   :  { %v1649_v24 = vmul.f32 %v1647_v34, %v1644_v32 }
 0xbf9   :  { %v3581_v51 = vadd.f32 %v1650_v43, %v1649_v24 }
 0xbfb   :  { %1653 = vrot.lane.b32.xlu0 %v3581_v51, %s3101_s21 }
 0xc6d   :  { %v1654_v47 = vpop.permute.xlu0 %1653 }
 0xc6e   :  { %v1655_v52 = vsel %vm502_vm14, %v1654_v47, 0 }
 0xc6f   :  { %v1677_v28 = vand.u32 4294901760, %v1655_v52 }
 0xc71   :  { %v1678_v63 = vsub.f32 %v1655_v52, %v1677_v28  ;;  %1723 = vmatmul.f32.vlgmr.msra.gmra.mxu3 %v1677_v28 }
 0xc72   :  { %2000 = vmatpush.msra.mxu3 %v3167_v29 }
 0xc73   :  { %v1679_v61 = vand.u32 4294901760, %v1678_v63  ;;  %1753 = vmatmul.f32.vlgmr.msra.gmra.mxu0 %v1678_v63 }
 0xc74   :  { %2002 = vmatpush.msra.mxu3 %v3184_v35  ;;  %2029 = vmatpush.msra.mxu0 %v3174_v31 }
 0xc75   :  { %v1680_v37 = vsub.f32 %v1678_v63, %v1679_v61  ;;  %1780 = vmatmul.f32.vlgmr.msra.gmra.mxu1 %v1679_v61 }
 0xc76   :  { %2004 = vmatpush.msra.mxu3 %v3214_v50  ;;  %2060 = vmatpush.msra.mxu1 %v3167_v29 }
 0xc77   :  { %v1681_v5 = vand.u32 4294901760, %v1680_v37  ;;  %2033 = vmatpush.msra.mxu0 %v3191_v38 }
 0xc78   :  { %2006 = vmatpush.msra.mxu3 %v3257_v11  ;;  %2062 = vmatpush.msra.mxu1 %v3184_v35 }
 0xc79   :  { %1682 = vmatmul.f32.vlgmr.msra.gmra.mxu2 %v1681_v5  ;;  %1838 = vmatmul.f32.vlgmr.msrb.gmra.mxu3 %v1677_v28 }
 0xc7a   :  { %1971 = vmatpush.msra.mxu2 %v3171_v30  ;;  %2064 = vmatpush.msra.mxu1 %v3214_v50 }
 0xc7b   :  { %2037 = vmatpush.msra.mxu0 %v3235_v59  ;;  %2163 = vmatpush.msrb.mxu3 %v3178_v33 }
 0xc7c   :  { %1974 = vmatpush.msra.mxu2 %v3188_v36  ;;  %2066 = vmatpush.msra.mxu1 %v3257_v11 }
 0xc7d   :  { %2041 = vmatpush.msra.mxu0 %v3273_v18  ;;  %2169 = vmatpush.msrb.mxu3 %v3197_v41 }
 0xc7e   :  { %1977 = vmatpush.msra.mxu2 %v3222_v54 }
 0xc7f   :  { %2175 = vmatpush.msrb.mxu3 %v3241_v1 }
 0xc80   :  { %1980 = vmatpush.msra.mxu2 %v3264_v13 }
 0xc81   :  { %1813 = vmatmul.f32.vlgmr.msrb.gmra.mxu2 %v1677_v28  ;;  %2181 = vmatpush.msrb.mxu3 %v3280_v22 }
 0xc82   :  { %2130 = vmatpush.msrb.mxu2 %v3167_v29 }
 0xc84   :  { %2132 = vmatpush.msrb.mxu2 %v3184_v35 }
 0xc86   :  { %2134 = vmatpush.msrb.mxu2 %v3214_v50 }
 0xc88   :  { %2136 = vmatpush.msrb.mxu2 %v3257_v11 }
 0xcf0   :  { %v1754_v62 = vpop.f32.mrf.mxu0 }
 0xcf2   :  { %v1781_v60 = vpop.f32.mrf.mxu1 }
 0xcf4   :  { %v1724_v33 = vpop.f32.mrf.mxu3 }
 0xcfc   :  { %v1683_v55 = vpop.f32.mrf.mxu2  ;;  %v1839_v6 = vpop.f32.mrf.mxu3 }
 0xcfd   :  { %v1725_v41 = vadd.f32 %v1724_v33, %v1683_v55 }
 0xcff   :  { %v1755_v48 = vadd.f32 %v1754_v62, %v1725_v41 }
 0xd01   :  { %v1782_v1 = vadd.f32 %v1781_v60, %v1755_v48 }
 0xd04   :  { %v1814_v46 = vpop.f32.mrf.mxu2 }
 0xd05   :  { %v1815_v49 = vadd.f32 %v1814_v46, %v1782_v1 }
 0xd07   :  { %v1840_v7 = vadd.f32 %v1839_v6, %v1815_v49 }
 0xd09   :  { %v1862_v22 = vadd.f32 %v3409_v42, %v1840_v7  ;;  %v1842_v4 = vadd.f32 %v1840_v7, %v3419_v16 }
 0xd0b   :  { %1864 = vrot.lane.b32.xlu1 %v1862_v22, %s3100_s20  ;;  %v3001_v9 = vmul.f32 -1.442695, %v1842_v4 }
 0xd0d   :  { %3049 = vpow2.f32 %v3001_v9 }
 0xd13   :  { %v3050_v53 = vpop.eup %3049 }
 0xd14   :  { %v1846_v45 = vadd.f32 1.0, %v3050_v53 }
 0xd16   :  { %3051 = vrcp.f32 %v1846_v45  ;;  %v1858_v56 = vand.u32 2147483648, %v1846_v45  ;;  %vm1852_vm3 = vweird.f32 %v1846_v45  ;;  %v1856_v10 = vand.u32 2147483647, %v1846_v45 }
 0xd18   :  { %v1859_v8 = vor.u32 1.1754944e-38, %v1858_v56  ;;  %vm1857_vm5 = vcmp.eq.f32.partialorder %v1856_v10, 8.507059e+37 }
 0xd1c   :  { %v3052_v0 = vpop.eup %3051 }
 0xd1d   :  { %v1848_v2 = vmul.f32 %v3052_v0, %v1846_v45  ;;  %vm1853_vm2 = vweird.f32 %v3052_v0 }
 0xd1e   :  { %vm1854_vm4 = vmor %vm1852_vm3, %vm1853_vm2  ;;  %vm2552_vm2 = vcmask 1041408   ;;  %vm2920_vm3 = vcmask 15360  }
 0xd1f   :  { %v1849_v3 = vsub.f32 1.0, %v1848_v2 }
 0xd21   :  { %v1850_v58 = vmul.f32 %v3052_v0, %v1849_v3 }
 0xd23   :  { %v1851_v15 = vadd.f32 %v3052_v0, %v1850_v58 }
 0xd25   :  { %v1855_v42 = vsel %vm1854_vm4, %v3052_v0, %v1851_v15  ;;  %vm2922_vm4 = vcmask 17408  }
 0xd26   :  { %v1860_v12 = vsel %vm1857_vm5, %v1859_v8, %v1855_v42 }
 0xd27   :  { %v1874_v21 = vsub.f32 1.0, %v1860_v12  ;;  %v1880_v27 = vmul.f32 %v1860_v12, %v3581_v51 }
 0xd7d   :  { %v1865_v14 = vpop.permute.xlu1 %1864 }
 0xd7e   :  { %v1867_v17 = vmul.f32 %v1865_v14, %v1860_v12 }
 0xd80   :  { %1869 = vrot.lane.b32.xlu2 %v1867_v17, %s3100_s20 }
 0xdda   :  { %v1870_v19 = vpop.permute.xlu2 %1869 }
 0xddb   :  { %v1872_v20 = vadd.f32 %v1870_v19, %v3419_v16 }
 0xddd   :  { %3053 = vtanh.f32 %v1872_v20 }
 0xde3   :  { %v3054_v25 = vpop.eup %3053 }
 0xde4   :  { %1876 = vrot.lane.b32.xlu0 %v3054_v25, %s3101_s21 }
 0xe56   :  { %v1877_v26 = vpop.permute.xlu0 %1876 }
 0xe57   :  { %v1879_v57 = vmul.f32 %v1877_v26, %v1874_v21 }
 0xe59   :  { %v3617_v32 = vadd.f32 %v1880_v27, %v1879_v57 }
 0xe5b   :  { %1883 = vrot.lane.b32.xlu1 %v3617_v32, %s3101_s21 }
 0xecd   :  { %v1884_v34 = vpop.permute.xlu1 %1883 }
 0xece   :  { %v1885_v43 = vsel %vm502_vm14, %v1884_v34, 0 }
 0xecf   :  { %v1907_v24 = vand.u32 4294901760, %v1885_v43 }
 0xed1   :  { %v1908_v47 = vsub.f32 %v1885_v43, %v1907_v24  ;;  %1953 = vmatmul.f32.vlgmr.msrb.gmra.mxu1 %v1907_v24 }
 0xed2   :  { %2230 = vmatpush.msrb.mxu1 %v3167_v29 }
 0xed3   :  { %v1909_v16 = vand.u32 4294901760, %v1908_v47  ;;  %1983 = vmatmul.f32.vlgmr.msra.gmra.mxu2 %v1908_v47 }
 0xed4   :  { %2232 = vmatpush.msrb.mxu1 %v3184_v35  ;;  %2259 = vmatpush.msra.mxu2 %v3174_v31 }
 0xed5   :  { %v1910_v51 = vsub.f32 %v1908_v47, %v1909_v16  ;;  %2010 = vmatmul.f32.vlgmr.msra.gmra.mxu3 %v1909_v16 }
 0xed6   :  { %2234 = vmatpush.msrb.mxu1 %v3214_v50  ;;  %2290 = vmatpush.msra.mxu3 %v3167_v29 }
 0xed7   :  { %v1911_v52 = vand.u32 4294901760, %v1910_v51  ;;  %2263 = vmatpush.msra.mxu2 %v3191_v38 }
 0xed8   :  { %2236 = vmatpush.msrb.mxu1 %v3257_v11  ;;  %2292 = vmatpush.msra.mxu3 %v3184_v35 }
 0xed9   :  { %1912 = vmatmul.f32.vlgmr.msrb.gmra.mxu0 %v1911_v52  ;;  %2068 = vmatmul.f32.vlgmr.msra.gmra.mxu1 %v1907_v24 }
 0xeda   :  { %2201 = vmatpush.msrb.mxu0 %v3171_v30  ;;  %2294 = vmatpush.msra.mxu3 %v3214_v50 }
 0xedb   :  { %2267 = vmatpush.msra.mxu2 %v3235_v59 }
 0xedc   :  { %2204 = vmatpush.msrb.mxu0 %v3188_v36  ;;  %2296 = vmatpush.msra.mxu3 %v3257_v11  ;;  %v3071_v11 = vld [vmem:[%s3713_s2 + $0x34] ss:$0 sm:$0xff]  ;;  %s3103_s2 = smov 1  }
 0xedd   :  { %2271 = vmatpush.msra.mxu2 %v3273_v18 }
 0xede   :  { %2207 = vmatpush.msrb.mxu0 %v3222_v54 }
 0xee0   :  { %2210 = vmatpush.msrb.mxu0 %v3264_v13 }
 0xee1   :  { %2043 = vmatmul.f32.vlgmr.msra.gmra.mxu0 %v1907_v24  ;;  %v443_v24 = vadd.f32 %v3498_v39, %v3400_v40 }
 0xee3   :  { %v495_v47 = vadd.f32 %v3500_v44, %v443_v24 }
 0xf4e   :  { %v1954_v29 = vpop.f32.mrf.mxu1 }
 0xf56   :  { %v1913_v31 = vpop.f32.mrf.mxu0  ;;  %v1984_v38 = vpop.f32.mrf.mxu2 }
 0xf57   :  { %v1955_v35 = vadd.f32 %v1954_v29, %v1913_v31  ;;  %v2069_v61 = vpop.f32.mrf.mxu1 }
 0xf58   :  { %v2011_v28 = vpop.f32.mrf.mxu3 }
 0xf59   :  { %v1985_v30 = vadd.f32 %v1984_v38, %v1955_v35 }
 0xf5b   :  { %v2012_v50 = vadd.f32 %v2011_v28, %v1985_v30 }
 0xf5e   :  { %v2044_v63 = vpop.f32.mrf.mxu0 }
 0xf5f   :  { %v2045_v59 = vadd.f32 %v2044_v63, %v2012_v50 }
 0xf61   :  { %v2070_v36 = vadd.f32 %v2069_v61, %v2045_v59 }
 0xf63   :  { %v2092_v18 = vadd.f32 %v3071_v11, %v2070_v36  ;;  %v2072_v54 = vadd.f32 %v2070_v36, %v3423_v23 }
 0xf65   :  { %2094 = vrot.lane.b32.xlu2 %v2092_v18, %s3100_s20  ;;  %v3002_v13 = vmul.f32 -1.442695, %v2072_v54  ;;  %v2346_v54 = vld [vmem:[%s3714_s3 + $0x1b] sm:$0xff] }
 0xf67   :  { %3055 = vpow2.f32 %v3002_v13  ;;  %v2345_v13 = vld [vmem:[%s3714_s3 + $0x13] sm:$0xff] }
 0xf6d   :  { %v3056_v37 = vpop.eup %3055 }
 0xf6e   :  { %v2076_v5 = vadd.f32 1.0, %v3056_v37  ;;  %v2374_v37 = vand.u32 4294901760, %v2346_v54 }
 0xf70   :  { %3057 = vrcp.f32 %v2076_v5  ;;  %v2088_v60 = vand.u32 2147483648, %v2076_v5  ;;  %vm2082_vm7 = vweird.f32 %v2076_v5  ;;  %v2086_v1 = vand.u32 2147483647, %v2076_v5  ;;  %2375 = vmatpush.msra.mxu0 %v2374_v37 }
 0xf72   :  { %v2089_v49 = vor.u32 1.1754944e-38, %v2088_v60  ;;  %vm2087_vm9 = vcmp.eq.f32.partialorder %v2086_v1, 8.507059e+37 }
 0xf76   :  { %v3058_v33 = vpop.eup %3057 }
 0xf77   :  { %v2078_v55 = vmul.f32 %v3058_v33, %v2076_v5  ;;  %vm2083_vm6 = vweird.f32 %v3058_v33  ;;  %v2376_v5 = vand.u32 4294901760, %v2345_v13 }
 0xf78   :  { %vm2084_vm8 = vmor %vm2082_vm7, %vm2083_vm6 }
 0xf79   :  { %v2079_v41 = vsub.f32 1.0, %v2078_v55  ;;  %v2410_v55 = vsub.f32 %v2345_v13, %v2376_v5  ;;  %2377 = vmatpush.msra.mxu0 %v2376_v5 }
 0xf7b   :  { %v2080_v62 = vmul.f32 %v3058_v33, %v2079_v41 }
 0xf7d   :  { %v2081_v48 = vadd.f32 %v3058_v33, %v2080_v62  ;;  %v2411_v62 = vand.u32 4294901760, %v2410_v55 }
 0xf7f   :  { %v2085_v46 = vsel %vm2084_vm8, %v3058_v33, %v2081_v48  ;;  %v2404_v33 = vsub.f32 %v2346_v54, %v2374_v37  ;;  %v2412_v60 = vsub.f32 %v2410_v55, %v2411_v62 }
 0xf80   :  { %v2090_v7 = vsel %vm2087_vm9, %v2089_v49, %v2085_v46 }
 0xf81   :  { %v2104_v45 = vsub.f32 1.0, %v2090_v7  ;;  %v2110_v2 = vmul.f32 %v2090_v7, %v3617_v32  ;;  %v2405_v41 = vand.u32 4294901760, %v2404_v33  ;;  %v2413_v46 = vand.u32 4294901760, %v2412_v60 }
 0xf83   :  { %v2406_v48 = vsub.f32 %v2404_v33, %v2405_v41 }
 0xf85   :  { %v2407_v1 = vand.u32 4294901760, %v2406_v48 }
 0xf87   :  { %2408 = vmatpush.msra.mxu1 %v2407_v1  ;;  %v3015_v1 = vld [vmem:[%s3714_s3 + $0x44] ss:$0 sm:$0xff] }
 0xf89   :  { %2414 = vmatpush.msra.mxu1 %v2413_v46 }
 0xfbf   :  { %v2095_v6 = vpop.permute.xlu2 %2094 }
 0xfc0   :  { %v2097_v22 = vmul.f32 %v2095_v6, %v2090_v7 }
 0xfc2   :  { %2099 = vrot.lane.b32.xlu0 %v2097_v22, %s3100_s20 }
0x1034   :  { %v2100_v4 = vpop.permute.xlu0 %2099 }
0x1035   :  { %v2102_v9 = vadd.f32 %v2100_v4, %v3423_v23 }
0x1037   :  { %3059 = vtanh.f32 %v2102_v9  ;;  %v2344_v9 = vld [vmem:[%s3714_s3 + $0xb] sm:$0xff] }
0x103d   :  { %v3060_v53 = vpop.eup %3059 }
0x103e   :  { %2106 = vrot.lane.b32.xlu1 %v3060_v53, %s3101_s21  ;;  %v2378_v53 = vand.u32 4294901760, %v2344_v9 }
0x1040   :  { %2379 = vmatpush.msra.mxu0 %v2378_v53 }
0x10b0   :  { %v2107_v0 = vpop.permute.xlu1 %2106 }
0x10b1   :  { %v2109_v3 = vmul.f32 %v2107_v0, %v2104_v45  ;;  %v2343_v45 = vld [vmem:[%s3714_s3 + $0x3] sm:$0xff]  ;;  %v2416_v0 = vsub.f32 %v2344_v9, %v2378_v53 }
0x10b3   :  { %v3647_v58 = vadd.f32 %v2110_v2, %v2109_v3  ;;  %v2380_v2 = vand.u32 4294901760, %v2343_v45  ;;  %v2417_v3 = vand.u32 4294901760, %v2416_v0 }
0x10b5   :  { %2113 = vrot.lane.b32.xlu2 %v3647_v58, %s3101_s21  ;;  %2381 = vmatpush.msra.mxu0 %v2380_v2 }
0x110f   :  { %v2114_v15 = vpop.permute.xlu2 %2113 }
0x1110   :  { %v2115_v56 = vsel %vm502_vm14, %v2114_v15, 0  ;;  %v2422_v15 = vsub.f32 %v2343_v45, %v2380_v2 }
0x1111   :  { %v2137_v10 = vand.u32 4294901760, %v2115_v56 }
0x1113   :  { %v2138_v42 = vsub.f32 %v2115_v56, %v2137_v10  ;;  %2183 = vmatmul.f32.vlgmr.msrb.gmra.mxu3 %v2137_v10  ;;  %v2423_v56 = vand.u32 4294901760, %v2422_v15 }
0x1114   :  { %2475 = vmatpush.msrb.mxu3 %v2374_v37 }
0x1115   :  { %v2139_v23 = vand.u32 4294901760, %v2138_v42  ;;  %2213 = vmatmul.f32.vlgmr.msrb.gmra.mxu0 %v2138_v42 }
0x1116   :  { %2477 = vmatpush.msrb.mxu3 %v2376_v5  ;;  %2504 = vmatpush.msrb.mxu0 %v2405_v41 }
0x1117   :  { %v2140_v8 = vsub.f32 %v2138_v42, %v2139_v23  ;;  %2240 = vmatmul.f32.vlgmr.msrb.gmra.mxu1 %v2139_v23  ;;  %v2424_v42 = vsub.f32 %v2422_v15, %v2423_v56 }
0x1118   :  { %2479 = vmatpush.msrb.mxu3 %v2378_v53  ;;  %2508 = vmatpush.msrb.mxu0 %v2411_v62 }
0x1119   :  { %v2141_v14 = vand.u32 4294901760, %v2140_v8  ;;  %v2425_v23 = vand.u32 4294901760, %v2424_v42  ;;  %v2342_v8 = vld [vmem:[%s3714_s3] sm:$0x7] }
0x111a   :  { %2481 = vmatpush.msrb.mxu3 %v2380_v2  ;;  %2512 = vmatpush.msrb.mxu0 %v2417_v3 }
0x111b   :  { %2142 = vmatmul.f32.vlgmr.msrb.gmra.mxu2 %v2141_v14  ;;  %2298 = vmatmul.f32.vlgmr.msra.gmra.mxu3 %v2137_v10  ;;  %v2561_v14 = vsel %vm2559_vm15, %v2342_v8, 0 }
0x111c   :  { %2446 = vmatpush.msrb.mxu2 %v2404_v33  ;;  %2516 = vmatpush.msrb.mxu0 %v2423_v56 }
0x111e   :  { %2449 = vmatpush.msrb.mxu2 %v2410_v55 }
0x1120   :  { %2452 = vmatpush.msrb.mxu2 %v2416_v0 }
0x1122   :  { %2455 = vmatpush.msrb.mxu2 %v2422_v15 }
0x1123   :  { %2273 = vmatmul.f32.vlgmr.msra.gmra.mxu2 %v2137_v10 }
0x1192   :  { %v2214_v20 = vpop.f32.mrf.mxu0 }
0x1194   :  { %v2241_v21 = vpop.f32.mrf.mxu1 }
0x1196   :  { %v2184_v12 = vpop.f32.mrf.mxu3 }
0x119e   :  { %v2143_v17 = vpop.f32.mrf.mxu2  ;;  %v2299_v32 = vpop.f32.mrf.mxu3 }
0x119f   :  { %v2185_v19 = vadd.f32 %v2184_v12, %v2143_v17  ;;  %v2578_v12 = vand.u32 4294901760, %v2561_v14 }
0x11a1   :  { %v2215_v25 = vadd.f32 %v2214_v20, %v2185_v19  ;;  %2579 = vmatpush.msra.mxu2 %v2578_v12  ;;  %v2605_v17 = vsub.f32 %v2561_v14, %v2578_v12 }
0x11a3   :  { %v2242_v26 = vadd.f32 %v2241_v21, %v2215_v25  ;;  %v2606_v19 = vand.u32 4294901760, %v2605_v17  ;;  %v2355_v21 = vld [vmem:[%s3712_s1] sm:$0x3f] }
0x11a5   :  { %v2607_v20 = vsub.f32 %v2605_v17, %v2606_v19 }
0x11a6   :  { %v2274_v27 = vpop.f32.mrf.mxu2 }
0x11a7   :  { %v2275_v57 = vadd.f32 %v2274_v27, %v2242_v26  ;;  %v2608_v25 = vand.u32 4294901760, %v2607_v20  ;;  %v2557_v26 = vsel %vm2555_vm1, %v2355_v21, 0 }
0x11a8   :  { %v2580_v27 = vand.u32 4294901760, %v2557_v26 }
0x11a9   :  { %v2300_v34 = vadd.f32 %v2299_v32, %v2275_v57  ;;  %2609 = vmatpush.msra.mxu3 %v2608_v25 }
0x11aa   :  { %v2581_v57 = vsub.f32 %v2557_v26, %v2580_v27 }
0x11ab   :  { %v2322_v43 = vadd.f32 %v3071_v11, %v2300_v34  ;;  %v2302_v16 = vadd.f32 %v2300_v34, %v495_v47 }
0x11ac   :  { %v2582_v24 = vand.u32 4294901760, %v2581_v57 }
0x11ad   :  { %2324 = vrot.lane.b32.xlu0 %v2322_v43, %s3100_s20  ;;  %v3003_v51 = vmul.f32 -1.442695, %v2302_v16 }
0x11af   :  { %3061 = vpow2.f32 %v3003_v51  ;;  %v2583_v51 = vsub.f32 %v2581_v57, %v2582_v24 }
0x11b5   :  { %v3062_v52 = vpop.eup %3061 }
0x11b6   :  { %v2306_v29 = vadd.f32 1.0, %v3062_v52 }
0x11b8   :  { %3063 = vrcp.f32 %v2306_v29  ;;  %v2318_v50 = vand.u32 2147483648, %v2306_v29  ;;  %vm2312_vm11 = vweird.f32 %v2306_v29  ;;  %v2316_v63 = vand.u32 2147483647, %v2306_v29 }
0x11ba   :  { %v2319_v40 = vor.u32 1.1754944e-38, %v2318_v50  ;;  %vm2317_vm13 = vcmp.eq.f32.partialorder %v2316_v63, 8.507059e+37  ;;  %v2348_v63 = vld [vmem:[%s3714_s3 + $0x2b] sm:$0xff] }
0x11be   :  { %v3064_v31 = vpop.eup %3063 }
0x11bf   :  { %v2308_v35 = vmul.f32 %v3064_v31, %v2306_v29  ;;  %vm2313_vm10 = vweird.f32 %v3064_v31 }
0x11c0   :  { %vm2314_vm12 = vmor %vm2312_vm11, %vm2313_vm10 }
0x11c1   :  { %v2309_v38 = vsub.f32 1.0, %v2308_v35  ;;  %v2350_v35 = vld [vmem:[%s3714_s3 + $0x3b] sm:$0xff] }
0x11c3   :  { %v2310_v30 = vmul.f32 %v3064_v31, %v2309_v38  ;;  %v2727_v38 = vand.u32 4294901760, %v2350_v35 }
0x11c5   :  { %v2311_v28 = vadd.f32 %v3064_v31, %v2310_v30  ;;  %v2349_v30 = vld [vmem:[%s3714_s3 + $0x33] sm:$0xff] }
0x11c6   :  { %v2729_v50 = vand.u32 4294901760, %v2349_v30 }
0x11c7   :  { %v2315_v59 = vsel %vm2314_vm12, %v3064_v31, %v2311_v28  ;;  %v2584_v31 = vand.u32 4294901760, %v2583_v51  ;;  %v2757_v28 = vsub.f32 %v2350_v35, %v2727_v38  ;;  %v3016_v51 = vld [vmem:[%s3714_s3 + $0x45] ss:$0 sm:$0xff] }
0x11c8   :  { %v2320_v44 = vsel %vm2317_vm13, %v2319_v40, %v2315_v59  ;;  %v2763_v40 = vsub.f32 %v2349_v30, %v2729_v50 }
0x11c9   :  { %v2334_v49 = vsub.f32 1.0, %v2320_v44  ;;  %v2340_v7 = vmul.f32 %v2320_v44, %v3647_v58  ;;  %v2418_v58 = vsub.f32 %v2416_v0, %v2417_v3  ;;  %v2758_v59 = vand.u32 4294901760, %v2757_v28 }
0x11cb   :  { %v2419_v10 = vand.u32 4294901760, %v2418_v58 }
0x11cd   :  { %2420 = vmatpush.msra.mxu1 %v2419_v10 }
0x11cf   :  { %2426 = vmatpush.msra.mxu1 %v2425_v23 }
0x11d1   :  { %2535 = vmatpush.msrb.mxu1 %v2374_v37 }
0x11d3   :  { %2537 = vmatpush.msrb.mxu1 %v2376_v5 }
0x11d5   :  { %2539 = vmatpush.msrb.mxu1 %v2378_v53 }
0x11d7   :  { %2541 = vmatpush.msrb.mxu1 %v2380_v2 }
0x121f   :  { %v2325_v39 = vpop.permute.xlu0 %2324 }
0x1220   :  { %v2327_v61 = vmul.f32 %v2325_v39, %v2320_v44  ;;  %v2731_v39 = vand.u32 4294901760, %v2348_v63  ;;  %v2347_v44 = vld [vmem:[%s3714_s3 + $0x23] sm:$0xff] }
0x1222   :  { %2329 = vrot.lane.b32.xlu1 %v2327_v61, %s3100_s20  ;;  %v2759_v61 = vsub.f32 %v2757_v28, %v2758_v59 }
0x1224   :  { %v2760_v54 = vand.u32 4294901760, %v2759_v61 }
0x1294   :  { %v2330_v36 = vpop.permute.xlu1 %2329 }
0x1295   :  { %v2332_v11 = vadd.f32 %v2330_v36, %v495_v47  ;;  %v2764_v36 = vand.u32 4294901760, %v2763_v40 }
0x1297   :  { %3065 = vtanh.f32 %v2332_v11  ;;  %v2769_v11 = vsub.f32 %v2348_v63, %v2731_v39  ;;  %v2765_v13 = vsub.f32 %v2763_v40, %v2764_v36 }
0x1299   :  { %v2770_v37 = vand.u32 4294901760, %v2769_v11  ;;  %v2766_v33 = vand.u32 4294901760, %v2765_v13 }
0x129b   :  { %v2771_v55 = vsub.f32 %v2769_v11, %v2770_v37 }
0x129d   :  { %v3066_v18 = vpop.eup %3065  ;;  %v2772_v62 = vand.u32 4294901760, %v2771_v55 }
0x129e   :  { %2336 = vrot.lane.b32.xlu2 %v3066_v18, %s3101_s21  ;;  %v2733_v18 = vand.u32 4294901760, %v2347_v44 }
0x12a0   :  { %v2775_v5 = vsub.f32 %v2347_v44, %v2733_v18  ;;  %v3017_v44 = vld [vmem:[%s3714_s3 + $0x43] ss:$0 sm:$0xff] }
0x12a2   :  { %v2776_v41 = vand.u32 4294901760, %v2775_v5 }
0x12a4   :  { %v2777_v48 = vsub.f32 %v2775_v5, %v2776_v41 }
0x12a6   :  { %v2778_v46 = vand.u32 4294901760, %v2777_v48 }
0x12f8   :  { %v2337_v6 = vpop.permute.xlu2 %2336 }
0x12f9   :  { %v2339_v22 = vmul.f32 %v2337_v6, %v2334_v49 }
0x12fb   :  { %v2341_v4 = vadd.f32 %v2340_v7, %v2339_v22 }
0x12fd   :  { %2358 = vrot.lane.b32.xlu0 %v2341_v4, %s3101_s21 }
0x136f   :  { %v2359_v32 = vpop.permute.xlu0 %2358 }
0x1370   :  { %v2360_v34 = vsel %vm502_vm14, %v2359_v32, 0 }
0x1371   :  { %v2382_v43 = vand.u32 4294901760, %v2360_v34 }
0x1373   :  { %v2383_v47 = vsub.f32 %v2360_v34, %v2382_v43  ;;  %2428 = vmatmul.f32.vlgmr.msra.gmra.mxu1 %v2382_v43 }
0x1374   :  { %2655 = vmatpush.msra.mxu1 %v2578_v12 }
0x1375   :  { %v2384_v16 = vand.u32 4294901760, %v2383_v47  ;;  %2458 = vmatmul.f32.vlgmr.msrb.gmra.mxu2 %v2383_v47 }
0x1376   :  { %2681 = vmatpush.msrb.mxu2 %v2606_v19 }
0x1377   :  { %v2385_v52 = vsub.f32 %v2383_v47, %v2384_v16  ;;  %2485 = vmatmul.f32.vlgmr.msrb.gmra.mxu3 %v2384_v16 }
0x1378   :  { %2703 = vmatpush.msrb.mxu3 %v2578_v12 }
0x1379   :  { %v2386_v29 = vand.u32 4294901760, %v2385_v52 }
0x137b   :  { %2387 = vmatmul.f32.vlgmr.msra.gmra.mxu0 %v2386_v29  ;;  %2543 = vmatmul.f32.vlgmr.msrb.gmra.mxu1 %v2382_v43 }
0x137c   :  { %2632 = vmatpush.msra.mxu0 %v2605_v17  ;;  %2761 = vmatpush.msrb.mxu1 %v2760_v54 }
0x137d   :  { %2585 = vmatmul.f32.vlgmr.msra.gmra.mxu2 %v2584_v31 }
0x137e   :  { %2799 = vmatpush.msra.mxu2 %v2757_v28  ;;  %2767 = vmatpush.msrb.mxu1 %v2766_v33 }
0x137f   :  { %2611 = vmatmul.f32.vlgmr.msra.gmra.mxu3 %v2580_v27 }
0x1380   :  { %2828 = vmatpush.msra.mxu3 %v2727_v38  ;;  %2802 = vmatpush.msra.mxu2 %v2763_v40 }
0x1381   :  { %2773 = vmatpush.msrb.mxu1 %v2772_v62 }
0x1382   :  { %2830 = vmatpush.msra.mxu3 %v2729_v50  ;;  %2805 = vmatpush.msra.mxu2 %v2769_v11 }
0x1383   :  { %2518 = vmatmul.f32.vlgmr.msrb.gmra.mxu0 %v2382_v43  ;;  %2659 = vmatmul.f32.vlgmr.msra.gmra.mxu1 %v2582_v24 }
0x1384   :  { %2728 = vmatpush.msrb.mxu0 %v2727_v38  ;;  %2832 = vmatpush.msra.mxu3 %v2731_v39 }
0x1385   :  { %2683 = vmatmul.f32.vlgmr.msrb.gmra.mxu2 %v2580_v27  ;;  %2779 = vmatpush.msrb.mxu1 %v2778_v46 }
0x1386   :  { %2730 = vmatpush.msrb.mxu0 %v2729_v50  ;;  %2834 = vmatpush.msra.mxu3 %v2733_v18 }
0x1387   :  { %2705 = vmatmul.f32.vlgmr.msrb.gmra.mxu3 %v2580_v27  ;;  %2808 = vmatpush.msra.mxu2 %v2775_v5 }
0x1388   :  { %2732 = vmatpush.msrb.mxu0 %v2731_v39  ;;  %2888 = vmatpush.msra.mxu1 %v2727_v38 }
0x138a   :  { %2734 = vmatpush.msrb.mxu0 %v2733_v18  ;;  %2890 = vmatpush.msra.mxu1 %v2729_v50 }
0x138b   :  { %2635 = vmatmul.f32.vlgmr.msra.gmra.mxu0 %v2581_v57 }
0x138c   :  { %2857 = vmatpush.msra.mxu0 %v2758_v59  ;;  %2892 = vmatpush.msra.mxu1 %v2731_v39 }
0x138e   :  { %2861 = vmatpush.msra.mxu0 %v2764_v36  ;;  %2894 = vmatpush.msra.mxu1 %v2733_v18  ;;  %v3018_v18 = vld [vmem:[%s3714_s3 + $0x46] ss:$0 sm:$0xff]  ;;  %s3104_s3 = smov [#allocation2]  }
0x138f   :  { %s2953_s24 = sshll.u32 %s3104_s3, 4  ;;  %s2954_s24 = int_to_ptr.vmem [resolvable:$true] %s2953_s24 }
0x1390   :  { %2865 = vmatpush.msra.mxu0 %v2770_v37 }
0x1392   :  { %2869 = vmatpush.msra.mxu0 %v2776_v41 }
0x13f0   :  { %v2429_v60 = vpop.f32.mrf.mxu1 }
0x13f8   :  { %v2388_v49 = vpop.f32.mrf.mxu0  ;;  %v2459_v6 = vpop.f32.mrf.mxu2 }
0x13f9   :  { %v2389_v7 = vadd.f32 %v3015_v1, %v2388_v49  ;;  %v2544_v53 = vpop.f32.mrf.mxu1 }
0x13fa   :  { %v2486_v4 = vpop.f32.mrf.mxu3 }
0x13fb   :  { %v2430_v22 = vadd.f32 %v2429_v60, %v2389_v7 }
0x13fd   :  { %v2460_v9 = vadd.f32 %v2459_v6, %v2430_v22 }
0x13ff   :  { %v2487_v45 = vadd.f32 %v2486_v4, %v2460_v9 }
0x1400   :  { %v2519_v0 = vpop.f32.mrf.mxu0  ;;  %v2586_v2 = vpop.f32.mrf.mxu2 }
0x1401   :  { %v2520_v3 = vadd.f32 %v2519_v0, %v2487_v45  ;;  %v2660_v42 = vpop.f32.mrf.mxu1 }
0x1402   :  { %v2612_v15 = vpop.f32.mrf.mxu3 }
0x1403   :  { %v2545_v58 = vadd.f32 %v2544_v53, %v2520_v3  ;;  %v2613_v56 = vadd.f32 %v2612_v15, %v2586_v2 }
0x1405   :  { %v2548_v23 = vrot.slane %v2545_v58, 6  ;;  %v2550_v17 = vrot.slane %v2545_v58, 4 }
0x1407   :  { %v2553_v25 = vsel %vm2552_vm2, %v2545_v58, %v2548_v23 }
0x1408   :  { %v2636_v10 = vpop.f32.mrf.mxu0  ;;  %v2684_v14 = vpop.f32.mrf.mxu2  ;;  %v2554_v26 = vsel %vm104_vm0, %v2553_v25, %v2550_v17  ;;  %vm2903_vm0 = vcmask 259072  }
0x1409   :  { %v2637_v8 = vadd.f32 %v2636_v10, %v2613_v56 }
0x140a   :  { %v2706_v19 = vpop.f32.mrf.mxu3 }
0x140b   :  { %v2661_v12 = vadd.f32 %v2660_v42, %v2637_v8 }
0x140d   :  { %v2685_v20 = vadd.f32 %v2684_v14, %v2661_v12 }
0x140f   :  { %v2707_v21 = vadd.f32 %v2706_v19, %v2685_v20 }
0x1411   :  { %v2709_v27 = vadd.f32 %v2707_v21, %v2554_v26 }
0x1413   :  { %v2710_v57 = vmax.f32 %v2709_v27, 0.0 }
0x1415   :  { %v2713_v32 = vsel %vm502_vm14, %v2710_v57, 0  ;;  %vm2918_vm14 = vcmask 7168  }
0x1416   :  { %v2735_v34 = vand.u32 4294901760, %v2713_v32 }
0x1418   :  { %v2736_v43 = vsub.f32 %v2713_v32, %v2735_v34  ;;  %2781 = vmatmul.f32.vlgmr.msrb.gmra.mxu1 %v2735_v34 }
0x141a   :  { %v2737_v24 = vand.u32 4294901760, %v2736_v43  ;;  %2811 = vmatmul.f32.vlgmr.msra.gmra.mxu2 %v2736_v43 }
0x141c   :  { %v2738_v47 = vsub.f32 %v2736_v43, %v2737_v24  ;;  %2838 = vmatmul.f32.vlgmr.msra.gmra.mxu3 %v2737_v24 }
0x141e   :  { %v2739_v16 = vand.u32 4294901760, %v2738_v47 }
0x1420   :  { %2740 = vmatmul.f32.vlgmr.msrb.gmra.mxu0 %v2739_v16  ;;  %2896 = vmatmul.f32.vlgmr.msra.gmra.mxu1 %v2735_v34 }
0x1428   :  { %2871 = vmatmul.f32.vlgmr.msra.gmra.mxu0 %v2735_v34 }
0x1495   :  { %v2782_v52 = vpop.f32.mrf.mxu1 }
0x149d   :  { %v2741_v29 = vpop.f32.mrf.mxu0  ;;  %v2812_v38 = vpop.f32.mrf.mxu2 }
0x149e   :  { %v2742_v31 = vadd.f32 %v3016_v51, %v2741_v29  ;;  %v2897_v40 = vpop.f32.mrf.mxu1 }
0x149f   :  { %v2839_v28 = vpop.f32.mrf.mxu3 }
0x14a0   :  { %v2783_v35 = vadd.f32 %v2782_v52, %v2742_v31 }
0x14a2   :  { %v2813_v30 = vadd.f32 %v2812_v38, %v2783_v35 }
0x14a4   :  { %v2840_v50 = vadd.f32 %v2839_v28, %v2813_v30 }
0x14a5   :  { %v2872_v63 = vpop.f32.mrf.mxu0 }
0x14a6   :  { %v2873_v59 = vadd.f32 %v2872_v63, %v2840_v50 }
0x14a8   :  { %v2898_v39 = vadd.f32 %v2897_v40, %v2873_v59 }
0x14aa   :  { %v2900_v61 = vmax.f32 %v2898_v39, 0.0 }
0x14ac   :  { %v2902_v36 = vmul.f32 %v3017_v44, %v2900_v61 }
0x14ae   :  { %v2904_v11 = vsel %vm2903_vm0, %v2902_v36, 0.0 }
0x14af   :  { %2905 = vadd.xlane.f32.xlu1 %v2904_v11 }
0x1522   :  { %v2906_v54 = vpop.xlane.xlu1 %2905 }
0x1523   :  { %v2908_v13 = vadd.f32 %v3018_v18, %v2906_v54 }
0x1525   :  { %v2914_v37 = vrot.slane %v2908_v13, 4  ;;  %v2910_v5 = vrot.slane %v2908_v13, 2 }
0x1527   :  { %2915 = vrot.lane.b32.xlu0 %v2914_v37, %s3102_s23  ;;  %2911 = vrot.lane.b32.xlu2 %v2910_v5, %s3103_s2 }
0x1581   :  { %v2912_v33 = vpop.permute.xlu2 %2911 }
0x1582   :  { %v2919_v55 = vsel %vm2918_vm14, %v2908_v13, %v2912_v33 }
0x1599   :  { %v2916_v41 = vpop.permute.xlu0 %2915 }
0x159a   :  { %v2921_v62 = vsel %vm2920_vm3, %v2919_v55, %v2916_v41 }
0x159b   :  { %v2923_v48 = vsel %vm2922_vm4, %v2921_v62, -inf }
0x159c   :  { %2924 = vmax.xlane.f32.xlu2 %v2923_v48 }
0x160f   :  { %v2925_v60 = vpop.xlane.xlu2 %2924 }
0x1610   :  { %v2926_v1 = vsub.f32 %v2921_v62, %v2925_v60 }
0x1612   :  { %v2927_v46 = vmul.f32 1.442695, %v2926_v1 }
0x1614   :  { %3067 = vpow2.f32 %v2927_v46 }
0x161a   :  { %v3068_v49 = vpop.eup %3067 }
0x161b   :  { %v2929_v6 = vsel %vm2922_vm4, %v3068_v49, 0.0 }
0x161c   :  { %2930 = vadd.xlane.f32.xlu0 %v2929_v6 }
0x168f   :  { %v2931_v7 = vpop.xlane.xlu0 %2930 }
0x1690   :  { %3069 = vrcp.f32 %v2931_v7  ;;  %v2943_v53 = vand.u32 2147483648, %v2931_v7  ;;  %v2941_v0 = vand.u32 2147483647, %v2931_v7  ;;  %vm2937_vm6 = vweird.f32 %v2931_v7 }
0x1692   :  { %v2944_v3 = vor.u32 1.1754944e-38, %v2943_v53  ;;  %vm2942_vm8 = vcmp.eq.f32.partialorder %v2941_v0, 8.507059e+37 }
0x1696   :  { %v3070_v22 = vpop.eup %3069 }
0x1697   :  { %v2933_v4 = vmul.f32 %v3070_v22, %v2931_v7  ;;  %vm2938_vm5 = vweird.f32 %v3070_v22 }
0x1698   :  { %vm2939_vm7 = vmor %vm2937_vm6, %vm2938_vm5 }
0x1699   :  { %v2934_v9 = vsub.f32 1.0, %v2933_v4 }
0x169b   :  { %v2935_v45 = vmul.f32 %v3070_v22, %v2934_v9 }
0x169d   :  { %v2936_v2 = vadd.f32 %v3070_v22, %v2935_v45 }
0x169f   :  { %v2940_v15 = vsel %vm2939_vm7, %v3070_v22, %v2936_v2 }
0x16a0   :  { %v2945_v58 = vsel %vm2942_vm8, %v2944_v3, %v2940_v15 }
0x16a1   :  { %v2946_v56 = vmul.f32 %v3068_v49, %v2945_v58 }
0x16a3   :  { %2947 = vst.msk [vmem:[#allocation2] sm:$0x3] %vm2922_vm4, %v2946_v56 }
0x16a4   :  { %2958 = dma.vmem_to_hbm [thread:$0]  %s2954_s24, 32, %s2956_s27, [#allocation3]  }
0x16a5   :  { %3096 = dma.done.wait [#allocation3], 32  }
0x16a6   :  { %3097 = vsyncadd [#allocation3], 4294967264 }
0x16a7   :  { %2963 = vsyncpa [#allocation3], 1 }

</bundles_post_ra>
